<compile_context>
chip_gen: v6e
topology: v6e:2x2x1
jax: 0.10.0
libtpu: 0.0.40
codegen_flags: <defaults>
</compile_context>

<pallas_src>
import functools
import math

import jax
import jax.numpy as jnp
from jax.experimental import pallas as pl
from jax.experimental.pallas import tpu as pltpu


def _mdlstm_kernel(xp_ref, whh0_ref, whh1_ref, o_ref,
                   h_buf, s_buf, pre_buf, *, img_w, hidden_size, batch):
    """One grid step = one image row (raster order).

    xp_ref:   (1, img_w*B, 4H)  precomputed x@W_ih^T + summed biases for this row
    whh0_ref: (H, 4H)           W_hh[0]^T  ("above" weights)
    whh1_ref: (H, 4H)           W_hh[1]^T  ("left" weights)
    o_ref:    (1, img_w*B, H)   output h for this row
    h_buf:    (img_w*B, H)      rolling row buffer of h (previous row on entry)
    s_buf:    (img_w*B, H)      rolling row buffer of s (previous row on entry)
    pre_buf:  (img_w*B, 4H)     per-row gate pre-activations (scratch)
    """
    H = hidden_size
    B = batch
    r = pl.program_id(0)

    # Zero the rolling row buffers before the first row: the "above" neighbor
    # of row 0 is zero (only the bias survives; biases are folded into xp).
    @pl.when(r == 0)
    def _():
        h_buf[...] = jnp.zeros_like(h_buf)
        s_buf[...] = jnp.zeros_like(s_buf)

    # Row-level hoist: project the entire previous row of h through W_hh[0]^T
    # in one (img_w*B, H) x (H, 4H) matmul and fold it into the precomputed
    # input projection.  This is off the serial per-column dependency chain.
    pre_buf[...] = xp_ref[0] + jnp.dot(
        h_buf[...], whh0_ref[...], preferred_element_type=jnp.float32)

    whh1 = whh1_ref[...]  # (H, 4H), hoisted out of the column loop

    def col_step(c, carry):
        h_left, s_left = carry                      # (B, H) each, 0 at col 0
        off = c * B
        s_above = s_buf[pl.ds(off, B)]              # previous row's s at col c

        # Serial critical path: one small MXU push + gate math per pixel.
        gates = pre_buf[pl.ds(off, B)] + jnp.dot(
            h_left, whh1, preferred_element_type=jnp.float32)   # (B, 4H)

        # NOTE: H=32 gate slices cut inside a single 128-lane vreg; fine at toy
        # sizes (pad/realign gate boundaries if H, B become production-sized).
        ingate = jax.nn.sigmoid(gates[:, 0:H])
        forgetgate = jax.nn.sigmoid(gates[:, H:2 * H])
        cellgate = jnp.tanh(gates[:, 2 * H:3 * H])
        outgate = jax.nn.sigmoid(gates[:, 3 * H:4 * H])

        s_new = forgetgate * (s_above + s_left) + ingate * cellgate
        h_new = outgate * jnp.tanh(s_new)

        # Overwrite the row buffers in place so the next grid step (next row)
        # sees this row as its "above" neighbor.  Off the dependency chain.
        h_buf[pl.ds(off, B)] = h_new
        s_buf[pl.ds(off, B)] = s_new
        return h_new, s_new

    z = jnp.zeros((B, H), jnp.float32)
    jax.lax.fori_loop(0, img_w, col_step, (z, z), unroll=True)

    # One bulk store of the whole row of outputs.
    o_ref[0] = h_buf[...].astype(o_ref.dtype)


def mdlstm_forward(x, weight_ih, weight_hh, bias_ih, bias_hh, img_dim):
    """x: (B, input_size, H*W) -> (B, hidden, H*W), matching the torch module."""
    B, C, HW = x.shape
    img_h, img_w = img_dim
    assert HW == img_h * img_w
    Hs = weight_hh.shape[2]
    G = 4 * Hs
    f32 = jnp.float32

    # Hoisted input projection: one well-shaped GEMM over all pixels, with all
    # three biases folded in.  Shape (HW, B, G) -> (img_h, img_w*B, G) so each
    # grid step gets one contiguous row block.
    x_t = jnp.transpose(x, (2, 0, 1)).astype(f32)                      # (HW, B, C)
    b_all = (bias_ih + bias_hh[0] + bias_hh[1]).astype(f32)            # (G,)
    x_proj = jnp.einsum('pbc,gc->pbg', x_t, weight_ih.astype(f32)) + b_all
    x_proj = x_proj.reshape(img_h, img_w * B, G)

    whh0_t = jnp.transpose(weight_hh[0]).astype(f32)                   # (H, 4H)
    whh1_t = jnp.transpose(weight_hh[1]).astype(f32)                   # (H, 4H)

    kernel = functools.partial(_mdlstm_kernel, img_w=img_w,
                               hidden_size=Hs, batch=B)

    out = pl.pallas_call(
        kernel,
        out_shape=jax.ShapeDtypeStruct((img_h, img_w * B, Hs), f32),
        grid_spec=pltpu.PrefetchScalarGridSpec(
            num_scalar_prefetch=0,
            grid=(img_h,),                                             # one step per row
            in_specs=[
                pl.BlockSpec((1, img_w * B, G), lambda r: (r, 0, 0)),  # row of x_proj
                pl.BlockSpec((Hs, G), lambda r: (0, 0)),               # W_hh[0]^T
                pl.BlockSpec((Hs, G), lambda r: (0, 0)),               # W_hh[1]^T
            ],
            out_specs=pl.BlockSpec((1, img_w * B, Hs), lambda r: (r, 0, 0)),
            scratch_shapes=[
                pltpu.VMEM((img_w * B, Hs), f32),                      # h row buffer
                pltpu.VMEM((img_w * B, Hs), f32),                      # s row buffer
                pltpu.VMEM((img_w * B, G), f32),                       # row pre-activations
            ],
        ),
        compiler_params=pltpu.CompilerParams(
            dimension_semantics=("arbitrary",)),                       # sequential recurrence
    )(x_proj, whh0_t, whh1_t)

    # (img_h, img_w*B, Hs) -> (B, Hs, HW)  (pure layout plumbing in the wrapper)
    out = out.reshape(img_h, img_w, B, Hs)
    out = jnp.transpose(out, (2, 3, 0, 1)).reshape(B, Hs, HW)
    return out


def mdlstm_reference(x, weight_ih, weight_hh, bias_ih, bias_hh, img_dim):
    """Pure-JAX transcription of the torch forward, for verification."""
    B, C, HW = x.shape
    img_h, img_w = img_dim
    h_mat, s_mat = [], []
    for p in range(HW):
        row, col = p // img_w, p % img_w
        px = x[:, :, p]
        hidden = bias_hh[0] + bias_hh[1]
        if row > 0:
            hidden = hidden + h_mat[(row - 1) * img_w + col] @ weight_hh[0].T
        if col > 0:
            hidden = hidden + h_mat[row * img_w + col - 1] @ weight_hh[1].T
        gates = px @ weight_ih.T + bias_ih + hidden
        i, f, g, o = jnp.split(gates, 4, axis=1)
        i, f, g, o = jax.nn.sigmoid(i), jax.nn.sigmoid(f), jnp.tanh(g), jax.nn.sigmoid(o)
        s = i * g
        if row > 0:
            s = s + f * s_mat[(row - 1) * img_w + col]
        if col > 0:
            s = s + f * s_mat[row * img_w + col - 1]
        s_mat.append(s)
        h_mat.append(o * jnp.tanh(s))
    h = jnp.stack(h_mat, 0)                 # (HW, B, H)
    return jnp.transpose(h, (1, 2, 0))      # (B, H, HW)


if __name__ == "__main__":
    batch = 2
    input_size = 4
    hidden_size = 32
    img_dim = (16, 16)
    HW = img_dim[0] * img_dim[1]

    key = jax.random.PRNGKey(0)
    kx, kwih, kwhh, kbih, kbhh = jax.random.split(key, 5)
    stdv = 1.0 / math.sqrt(hidden_size)

    weight_ih = jax.random.uniform(kwih, (4 * hidden_size, input_size),
                                   jnp.float32, -stdv, stdv)
    weight_hh = jax.random.uniform(kwhh, (2, 4 * hidden_size, hidden_size),
                                   jnp.float32, -stdv, stdv)
    bias_ih = jax.random.uniform(kbih, (4 * hidden_size,), jnp.float32, -stdv, stdv)
    bias_hh = jax.random.uniform(kbhh, (2, 4 * hidden_size), jnp.float32, -stdv, stdv)

    x = jax.random.normal(kx, (batch, input_size, HW), jnp.float32)

    out = mdlstm_forward(x, weight_ih, weight_hh, bias_ih, bias_hh, img_dim)
    out = jax.block_until_ready(out)

    ref = mdlstm_reference(x, weight_ih, weight_hh, bias_ih, bias_hh, img_dim)
    assert out.shape == (batch, hidden_size, HW), out.shape
    assert jnp.allclose(out, ref, atol=5e-5, rtol=5e-5), \
        f"max abs err {jnp.max(jnp.abs(out - ref))}"

    print("KERNEL_OK")
</pallas_src>

<mosaic_0001>
module attributes {stable_mosaic.version = 11 : i64} {
  func.func @_mdlstm_kernel(%arg0: i32, %arg1: memref<1x32x128xf32, #tpu.memory_space<vmem>>, %arg2: memref<32x128xf32, #tpu.memory_space<vmem>>, %arg3: memref<32x128xf32, #tpu.memory_space<vmem>>, %arg4: memref<1x32x32xf32, #tpu.memory_space<vmem>>, %arg5: memref<32x32xf32, #tpu.memory_space<vmem>>, %arg6: memref<32x32xf32, #tpu.memory_space<vmem>>, %arg7: memref<32x128xf32, #tpu.memory_space<vmem>>) attributes {dimension_semantics = [#tpu.dimension_semantics<arbitrary>], iteration_bounds = array<i64: 16>, scalar_prefetch = 0 : i64, scratch_operands = 3 : i64, tpu.core_type = #tpu.core_type<tc>, window_params = [{transform_indices = @transform_0, window_bounds = array<i64: 1, 32, 128>}, {pipeline_mode = #tpu.pipeline_mode<synchronous>, transform_indices = @transform_1, window_bounds = array<i64: 32, 128>}, {pipeline_mode = #tpu.pipeline_mode<synchronous>, transform_indices = @transform_2, window_bounds = array<i64: 32, 128>}, {transform_indices = @transform_3, window_bounds = array<i64: 1, 32, 32>}]} {
    %c0_i32 = arith.constant 0 : i32
    %0 = arith.cmpi eq, %arg0, %c0_i32 : i32
    %1 = arith.extui %0 : i1 to i32
    %c0_i32_0 = arith.constant 0 : i32
    %2 = arith.cmpi ne, %1, %c0_i32_0 : i32
    scf.if %2 {
      %cst_162 = arith.constant 0.000000e+00 : f32
      %608 = vector.broadcast %cst_162 : f32 to vector<32x32xf32>
      %c0_163 = arith.constant 0 : index
      %c0_164 = arith.constant 0 : index
      %609 = vector.load %arg5[%c0_163, %c0_164] : memref<32x32xf32, #tpu.memory_space<vmem>>, vector<32x32xf32>
      tpu.vector_store %arg5[%c0_163, %c0_164], %608 {strides = array<i32>} : memref<32x32xf32, #tpu.memory_space<vmem>>, vector<32x32xf32>,
      %cst_165 = arith.constant 0.000000e+00 : f32
      %610 = vector.broadcast %cst_165 : f32 to vector<32x32xf32>
      %c0_166 = arith.constant 0 : index
      %c0_167 = arith.constant 0 : index
      %611 = vector.load %arg6[%c0_166, %c0_167] : memref<32x32xf32, #tpu.memory_space<vmem>>, vector<32x32xf32>
      tpu.vector_store %arg6[%c0_166, %c0_167], %610 {strides = array<i32>} : memref<32x32xf32, #tpu.memory_space<vmem>>, vector<32x32xf32>,
    } else {
    }
    %c0 = arith.constant 0 : index
    %c0_1 = arith.constant 0 : index
    %c0_2 = arith.constant 0 : index
    %3 = vector.load %arg1[%c0, %c0_1, %c0_2] : memref<1x32x128xf32, #tpu.memory_space<vmem>>, vector<1x32x128xf32>
    %4 = vector.shape_cast %3 : vector<1x32x128xf32> to vector<32x128xf32>
    %c0_3 = arith.constant 0 : index
    %c0_4 = arith.constant 0 : index
    %5 = vector.load %arg5[%c0_3, %c0_4] : memref<32x32xf32, #tpu.memory_space<vmem>>, vector<32x32xf32>
    %c0_5 = arith.constant 0 : index
    %c0_6 = arith.constant 0 : index
    %6 = vector.load %arg2[%c0_5, %c0_6] : memref<32x128xf32, #tpu.memory_space<vmem>>, vector<32x128xf32>
    %cst = arith.constant dense<0.000000e+00> : vector<32x128xf32>
    %7 = tpu.matmul %5, %6, %cst {dimension_numbers = #tpu.dot_dimension_numbers<[1], [0], [0], [1], [0, 0, 1, 1], [], []>} : vector<32x32xf32>, vector<32x128xf32>, vector<32x128xf32> -> vector<32x128xf32>
    %8 = arith.addf %4, %7 : vector<32x128xf32>
    %c0_7 = arith.constant 0 : index
    %c0_8 = arith.constant 0 : index
    %9 = vector.load %arg7[%c0_7, %c0_8] : memref<32x128xf32, #tpu.memory_space<vmem>>, vector<32x128xf32>
    tpu.vector_store %arg7[%c0_7, %c0_8], %8 {strides = array<i32>} : memref<32x128xf32, #tpu.memory_space<vmem>>, vector<32x128xf32>,
    %c0_9 = arith.constant 0 : index
    %c0_10 = arith.constant 0 : index
    %10 = vector.load %arg3[%c0_9, %c0_10] : memref<32x128xf32, #tpu.memory_space<vmem>>, vector<32x128xf32>
    %cst_11 = arith.constant 0.000000e+00 : f32
    %11 = vector.broadcast %cst_11 : f32 to vector<2x32xf32>
    %c0_i32_12 = arith.constant 0 : i32
    %c2_i32 = arith.constant 2 : i32
    %12 = arith.muli %c0_i32_12, %c2_i32 : i32
    %13 = arith.index_cast %12 : i32 to index
    %c0_13 = arith.constant 0 : index
    %14 = vector.load %arg6[%13, %c0_13] : memref<32x32xf32, #tpu.memory_space<vmem>>, vector<2x32xf32>
    %15 = arith.index_cast %12 : i32 to index
    %c0_14 = arith.constant 0 : index
    %16 = vector.load %arg7[%15, %c0_14] : memref<32x128xf32, #tpu.memory_space<vmem>>, vector<2x128xf32>
    %cst_15 = arith.constant dense<0.000000e+00> : vector<2x128xf32>
    %17 = tpu.matmul %11, %10, %cst_15 {dimension_numbers = #tpu.dot_dimension_numbers<[1], [0], [0], [1], [0, 0, 1, 1], [], []>} : vector<2x32xf32>, vector<32x128xf32>, vector<2x128xf32> -> vector<2x128xf32>
    %18 = arith.addf %16, %17 : vector<2x128xf32>
    %19 = vector.extract_strided_slice %18 {offsets = [0, 0], sizes = [2, 32], strides = [1, 1]} : vector<2x128xf32> to vector<2x32xf32>
    %20 = arith.negf %19 : vector<2x32xf32>
    %21 = math.exp %20 : vector<2x32xf32>
    %cst_16 = arith.constant 1.000000e+00 : f32
    %22 = vector.broadcast %cst_16 : f32 to vector<2x32xf32>
    %23 = arith.addf %22, %21 : vector<2x32xf32>
    %24 = arith.divf %22, %23 : vector<2x32xf32>
    %25 = vector.extract_strided_slice %18 {offsets = [0, 32], sizes = [2, 32], strides = [1, 1]} : vector<2x128xf32> to vector<2x32xf32>
    %26 = arith.negf %25 : vector<2x32xf32>
    %27 = math.exp %26 : vector<2x32xf32>
    %cst_17 = arith.constant 1.000000e+00 : f32
    %28 = vector.broadcast %cst_17 : f32 to vector<2x32xf32>
    %29 = arith.addf %28, %27 : vector<2x32xf32>
    %30 = arith.divf %28, %29 : vector<2x32xf32>
    %31 = vector.extract_strided_slice %18 {offsets = [0, 64], sizes = [2, 32], strides = [1, 1]} : vector<2x128xf32> to vector<2x32xf32>
    %32 = math.tanh %31 : vector<2x32xf32>
    %33 = vector.extract_strided_slice %18 {offsets = [0, 96], sizes = [2, 32], strides = [1, 1]} : vector<2x128xf32> to vector<2x32xf32>
    %34 = arith.negf %33 : vector<2x32xf32>
    %35 = math.exp %34 : vector<2x32xf32>
    %cst_18 = arith.constant 1.000000e+00 : f32
    %36 = vector.broadcast %cst_18 : f32 to vector<2x32xf32>
    %37 = arith.addf %36, %35 : vector<2x32xf32>
    %38 = arith.divf %36, %37 : vector<2x32xf32>
    %39 = arith.addf %14, %11 : vector<2x32xf32>
    %40 = arith.mulf %30, %39 : vector<2x32xf32>
    %41 = arith.mulf %24, %32 : vector<2x32xf32>
    %42 = arith.addf %40, %41 : vector<2x32xf32>
    %43 = math.tanh %42 : vector<2x32xf32>
    %44 = arith.mulf %38, %43 : vector<2x32xf32>
    %45 = arith.index_cast %12 : i32 to index
    %c0_19 = arith.constant 0 : index
    %46 = vector.load %arg5[%45, %c0_19] : memref<32x32xf32, #tpu.memory_space<vmem>>, vector<2x32xf32>
    tpu.vector_store %arg5[%45, %c0_19], %44 {strides = array<i32>} : memref<32x32xf32, #tpu.memory_space<vmem>>, vector<2x32xf32>,
    %47 = arith.index_cast %12 : i32 to index
    %c0_20 = arith.constant 0 : index
    %48 = vector.load %arg6[%47, %c0_20] : memref<32x32xf32, #tpu.memory_space<vmem>>, vector<2x32xf32>
    tpu.vector_store %arg6[%47, %c0_20], %42 {strides = array<i32>} : memref<32x32xf32, #tpu.memory_space<vmem>>, vector<2x32xf32>,
    %c1_i32 = arith.constant 1 : i32
    %c2_i32_21 = arith.constant 2 : i32
    %49 = arith.muli %c1_i32, %c2_i32_21 : i32
    %50 = arith.index_cast %49 : i32 to index
    %c0_22 = arith.constant 0 : index
    %51 = vector.load %arg6[%50, %c0_22] : memref<32x32xf32, #tpu.memory_space<vmem>>, vector<2x32xf32>
    %52 = arith.index_cast %49 : i32 to index
    %c0_23 = arith.constant 0 : index
    %53 = vector.load %arg7[%52, %c0_23] : memref<32x128xf32, #tpu.memory_space<vmem>>, vector<2x128xf32>
    %cst_24 = arith.constant dense<0.000000e+00> : vector<2x128xf32>
    %54 = tpu.matmul %44, %10, %cst_24 {dimension_numbers = #tpu.dot_dimension_numbers<[1], [0], [0], [1], [0, 0, 1, 1], [], []>} : vector<2x32xf32>, vector<32x128xf32>, vector<2x128xf32> -> vector<2x128xf32>
    %55 = arith.addf %53, %54 : vector<2x128xf32>
    %56 = vector.extract_strided_slice %55 {offsets = [0, 0], sizes = [2, 32], strides = [1, 1]} : vector<2x128xf32> to vector<2x32xf32>
    %57 = arith.negf %56 : vector<2x32xf32>
    %58 = math.exp %57 : vector<2x32xf32>
    %cst_25 = arith.constant 1.000000e+00 : f32
    %59 = vector.broadcast %cst_25 : f32 to vector<2x32xf32>
    %60 = arith.addf %59, %58 : vector<2x32xf32>
    %61 = arith.divf %59, %60 : vector<2x32xf32>
    %62 = vector.extract_strided_slice %55 {offsets = [0, 32], sizes = [2, 32], strides = [1, 1]} : vector<2x128xf32> to vector<2x32xf32>
    %63 = arith.negf %62 : vector<2x32xf32>
    %64 = math.exp %63 : vector<2x32xf32>
    %cst_26 = arith.constant 1.000000e+00 : f32
    %65 = vector.broadcast %cst_26 : f32 to vector<2x32xf32>
    %66 = arith.addf %65, %64 : vector<2x32xf32>
    %67 = arith.divf %65, %66 : vector<2x32xf32>
    %68 = vector.extract_strided_slice %55 {offsets = [0, 64], sizes = [2, 32], strides = [1, 1]} : vector<2x128xf32> to vector<2x32xf32>
    %69 = math.tanh %68 : vector<2x32xf32>
    %70 = vector.extract_strided_slice %55 {offsets = [0, 96], sizes = [2, 32], strides = [1, 1]} : vector<2x128xf32> to vector<2x32xf32>
    %71 = arith.negf %70 : vector<2x32xf32>
    %72 = math.exp %71 : vector<2x32xf32>
    %cst_27 = arith.constant 1.000000e+00 : f32
    %73 = vector.broadcast %cst_27 : f32 to vector<2x32xf32>
    %74 = arith.addf %73, %72 : vector<2x32xf32>
    %75 = arith.divf %73, %74 : vector<2x32xf32>
    %76 = arith.addf %51, %42 : vector<2x32xf32>
    %77 = arith.mulf %67, %76 : vector<2x32xf32>
    %78 = arith.mulf %61, %69 : vector<2x32xf32>
    %79 = arith.addf %77, %78 : vector<2x32xf32>
    %80 = math.tanh %79 : vector<2x32xf32>
    %81 = arith.mulf %75, %80 : vector<2x32xf32>
    %82 = arith.index_cast %49 : i32 to index
    %c0_28 = arith.constant 0 : index
    %83 = vector.load %arg5[%82, %c0_28] : memref<32x32xf32, #tpu.memory_space<vmem>>, vector<2x32xf32>
    tpu.vector_store %arg5[%82, %c0_28], %81 {strides = array<i32>} : memref<32x32xf32, #tpu.memory_space<vmem>>, vector<2x32xf32>,
    %84 = arith.index_cast %49 : i32 to index
    %c0_29 = arith.constant 0 : index
    %85 = vector.load %arg6[%84, %c0_29] : memref<32x32xf32, #tpu.memory_space<vmem>>, vector<2x32xf32>
    tpu.vector_store %arg6[%84, %c0_29], %79 {strides = array<i32>} : memref<32x32xf32, #tpu.memory_space<vmem>>, vector<2x32xf32>,
    %c2_i32_30 = arith.constant 2 : i32
    %c2_i32_31 = arith.constant 2 : i32
    %86 = arith.muli %c2_i32_30, %c2_i32_31 : i32
    %87 = arith.index_cast %86 : i32 to index
    %c0_32 = arith.constant 0 : index
    %88 = vector.load %arg6[%87, %c0_32] : memref<32x32xf32, #tpu.memory_space<vmem>>, vector<2x32xf32>
    %89 = arith.index_cast %86 : i32 to index
    %c0_33 = arith.constant 0 : index
    %90 = vector.load %arg7[%89, %c0_33] : memref<32x128xf32, #tpu.memory_space<vmem>>, vector<2x128xf32>
    %cst_34 = arith.constant dense<0.000000e+00> : vector<2x128xf32>
    %91 = tpu.matmul %81, %10, %cst_34 {dimension_numbers = #tpu.dot_dimension_numbers<[1], [0], [0], [1], [0, 0, 1, 1], [], []>} : vector<2x32xf32>, vector<32x128xf32>, vector<2x128xf32> -> vector<2x128xf32>
    %92 = arith.addf %90, %91 : vector<2x128xf32>
    %93 = vector.extract_strided_slice %92 {offsets = [0, 0], sizes = [2, 32], strides = [1, 1]} : vector<2x128xf32> to vector<2x32xf32>
    %94 = arith.negf %93 : vector<2x32xf32>
    %95 = math.exp %94 : vector<2x32xf32>
    %cst_35 = arith.constant 1.000000e+00 : f32
    %96 = vector.broadcast %cst_35 : f32 to vector<2x32xf32>
    %97 = arith.addf %96, %95 : vector<2x32xf32>
    %98 = arith.divf %96, %97 : vector<2x32xf32>
    %99 = vector.extract_strided_slice %92 {offsets = [0, 32], sizes = [2, 32], strides = [1, 1]} : vector<2x128xf32> to vector<2x32xf32>
    %100 = arith.negf %99 : vector<2x32xf32>
    %101 = math.exp %100 : vector<2x32xf32>
    %cst_36 = arith.constant 1.000000e+00 : f32
    %102 = vector.broadcast %cst_36 : f32 to vector<2x32xf32>
    %103 = arith.addf %102, %101 : vector<2x32xf32>
    %104 = arith.divf %102, %103 : vector<2x32xf32>
    %105 = vector.extract_strided_slice %92 {offsets = [0, 64], sizes = [2, 32], strides = [1, 1]} : vector<2x128xf32> to vector<2x32xf32>
    %106 = math.tanh %105 : vector<2x32xf32>
    %107 = vector.extract_strided_slice %92 {offsets = [0, 96], sizes = [2, 32], strides = [1, 1]} : vector<2x128xf32> to vector<2x32xf32>
    %108 = arith.negf %107 : vector<2x32xf32>
    %109 = math.exp %108 : vector<2x32xf32>
    %cst_37 = arith.constant 1.000000e+00 : f32
    %110 = vector.broadcast %cst_37 : f32 to vector<2x32xf32>
    %111 = arith.addf %110, %109 : vector<2x32xf32>
    %112 = arith.divf %110, %111 : vector<2x32xf32>
    %113 = arith.addf %88, %79 : vector<2x32xf32>
    %114 = arith.mulf %104, %113 : vector<2x32xf32>
    %115 = arith.mulf %98, %106 : vector<2x32xf32>
    %116 = arith.addf %114, %115 : vector<2x32xf32>
    %117 = math.tanh %116 : vector<2x32xf32>
    %118 = arith.mulf %112, %117 : vector<2x32xf32>
    %119 = arith.index_cast %86 : i32 to index
    %c0_38 = arith.constant 0 : index
    %120 = vector.load %arg5[%119, %c0_38] : memref<32x32xf32, #tpu.memory_space<vmem>>, vector<2x32xf32>
    tpu.vector_store %arg5[%119, %c0_38], %118 {strides = array<i32>} : memref<32x32xf32, #tpu.memory_space<vmem>>, vector<2x32xf32>,
    %121 = arith.index_cast %86 : i32 to index
    %c0_39 = arith.constant 0 : index
    %122 = vector.load %arg6[%121, %c0_39] : memref<32x32xf32, #tpu.memory_space<vmem>>, vector<2x32xf32>
    tpu.vector_store %arg6[%121, %c0_39], %116 {strides = array<i32>} : memref<32x32xf32, #tpu.memory_space<vmem>>, vector<2x32xf32>,
    %c3_i32 = arith.constant 3 : i32
    %c2_i32_40 = arith.constant 2 : i32
    %123 = arith.muli %c3_i32, %c2_i32_40 : i32
    %124 = arith.index_cast %123 : i32 to index
    %c0_41 = arith.constant 0 : index
    %125 = vector.load %arg6[%124, %c0_41] : memref<32x32xf32, #tpu.memory_space<vmem>>, vector<2x32xf32>
    %126 = arith.index_cast %123 : i32 to index
    %c0_42 = arith.constant 0 : index
    %127 = vector.load %arg7[%126, %c0_42] : memref<32x128xf32, #tpu.memory_space<vmem>>, vector<2x128xf32>
    %cst_43 = arith.constant dense<0.000000e+00> : vector<2x128xf32>
    %128 = tpu.matmul %118, %10, %cst_43 {dimension_numbers = #tpu.dot_dimension_numbers<[1], [0], [0], [1], [0, 0, 1, 1], [], []>} : vector<2x32xf32>, vector<32x128xf32>, vector<2x128xf32> -> vector<2x128xf32>
    %129 = arith.addf %127, %128 : vector<2x128xf32>
    %130 = vector.extract_strided_slice %129 {offsets = [0, 0], sizes = [2, 32], strides = [1, 1]} : vector<2x128xf32> to vector<2x32xf32>
    %131 = arith.negf %130 : vector<2x32xf32>
    %132 = math.exp %131 : vector<2x32xf32>
    %cst_44 = arith.constant 1.000000e+00 : f32
    %133 = vector.broadcast %cst_44 : f32 to vector<2x32xf32>
    %134 = arith.addf %133, %132 : vector<2x32xf32>
    %135 = arith.divf %133, %134 : vector<2x32xf32>
    %136 = vector.extract_strided_slice %129 {offsets = [0, 32], sizes = [2, 32], strides = [1, 1]} : vector<2x128xf32> to vector<2x32xf32>
    %137 = arith.negf %136 : vector<2x32xf32>
    %138 = math.exp %137 : vector<2x32xf32>
    %cst_45 = arith.constant 1.000000e+00 : f32
    %139 = vector.broadcast %cst_45 : f32 to vector<2x32xf32>
    %140 = arith.addf %139, %138 : vector<2x32xf32>
    %141 = arith.divf %139, %140 : vector<2x32xf32>
    %142 = vector.extract_strided_slice %129 {offsets = [0, 64], sizes = [2, 32], strides = [1, 1]} : vector<2x128xf32> to vector<2x32xf32>
    %143 = math.tanh %142 : vector<2x32xf32>
    %144 = vector.extract_strided_slice %129 {offsets = [0, 96], sizes = [2, 32], strides = [1, 1]} : vector<2x128xf32> to vector<2x32xf32>
    %145 = arith.negf %144 : vector<2x32xf32>
    %146 = math.exp %145 : vector<2x32xf32>
    %cst_46 = arith.constant 1.000000e+00 : f32
    %147 = vector.broadcast %cst_46 : f32 to vector<2x32xf32>
    %148 = arith.addf %147, %146 : vector<2x32xf32>
    %149 = arith.divf %147, %148 : vector<2x32xf32>
    %150 = arith.addf %125, %116 : vector<2x32xf32>
    %151 = arith.mulf %141, %150 : vector<2x32xf32>
    %152 = arith.mulf %135, %143 : vector<2x32xf32>
    %153 = arith.addf %151, %152 : vector<2x32xf32>
    %154 = math.tanh %153 : vector<2x32xf32>
    %155 = arith.mulf %149, %154 : vector<2x32xf32>
    %156 = arith.index_cast %123 : i32 to index
    %c0_47 = arith.constant 0 : index
    %157 = vector.load %arg5[%156, %c0_47] : memref<32x32xf32, #tpu.memory_space<vmem>>, vector<2x32xf32>
    tpu.vector_store %arg5[%156, %c0_47], %155 {strides = array<i32>} : memref<32x32xf32, #tpu.memory_space<vmem>>, vector<2x32xf32>,
    %158 = arith.index_cast %123 : i32 to index
    %c0_48 = arith.constant 0 : index
    %159 = vector.load %arg6[%158, %c0_48] : memref<32x32xf32, #tpu.memory_space<vmem>>, vector<2x32xf32>
    tpu.vector_store %arg6[%158, %c0_48], %153 {strides = array<i32>} : memref<32x32xf32, #tpu.memory_space<vmem>>, vector<2x32xf32>,
    %c4_i32 = arith.constant 4 : i32
    %c2_i32_49 = arith.constant 2 : i32
    %160 = arith.muli %c4_i32, %c2_i32_49 : i32
    %161 = arith.index_cast %160 : i32 to index
    %c0_50 = arith.constant 0 : index
    %162 = vector.load %arg6[%161, %c0_50] : memref<32x32xf32, #tpu.memory_space<vmem>>, vector<2x32xf32>
    %163 = arith.index_cast %160 : i32 to index
    %c0_51 = arith.constant 0 : index
    %164 = vector.load %arg7[%163, %c0_51] : memref<32x128xf32, #tpu.memory_space<vmem>>, vector<2x128xf32>
    %cst_52 = arith.constant dense<0.000000e+00> : vector<2x128xf32>
    %165 = tpu.matmul %155, %10, %cst_52 {dimension_numbers = #tpu.dot_dimension_numbers<[1], [0], [0], [1], [0, 0, 1, 1], [], []>} : vector<2x32xf32>, vector<32x128xf32>, vector<2x128xf32> -> vector<2x128xf32>
    %166 = arith.addf %164, %165 : vector<2x128xf32>
    %167 = vector.extract_strided_slice %166 {offsets = [0, 0], sizes = [2, 32], strides = [1, 1]} : vector<2x128xf32> to vector<2x32xf32>
    %168 = arith.negf %167 : vector<2x32xf32>
    %169 = math.exp %168 : vector<2x32xf32>
    %cst_53 = arith.constant 1.000000e+00 : f32
    %170 = vector.broadcast %cst_53 : f32 to vector<2x32xf32>
    %171 = arith.addf %170, %169 : vector<2x32xf32>
    %172 = arith.divf %170, %171 : vector<2x32xf32>
    %173 = vector.extract_strided_slice %166 {offsets = [0, 32], sizes = [2, 32], strides = [1, 1]} : vector<2x128xf32> to vector<2x32xf32>
    %174 = arith.negf %173 : vector<2x32xf32>
    %175 = math.exp %174 : vector<2x32xf32>
    %cst_54 = arith.constant 1.000000e+00 : f32
    %176 = vector.broadcast %cst_54 : f32 to vector<2x32xf32>
    %177 = arith.addf %176, %175 : vector<2x32xf32>
    %178 = arith.divf %176, %177 : vector<2x32xf32>
    %179 = vector.extract_strided_slice %166 {offsets = [0, 64], sizes = [2, 32], strides = [1, 1]} : vector<2x128xf32> to vector<2x32xf32>
    %180 = math.tanh %179 : vector<2x32xf32>
    %181 = vector.extract_strided_slice %166 {offsets = [0, 96], sizes = [2, 32], strides = [1, 1]} : vector<2x128xf32> to vector<2x32xf32>
    %182 = arith.negf %181 : vector<2x32xf32>
    %183 = math.exp %182 : vector<2x32xf32>
    %cst_55 = arith.constant 1.000000e+00 : f32
    %184 = vector.broadcast %cst_55 : f32 to vector<2x32xf32>
    %185 = arith.addf %184, %183 : vector<2x32xf32>
    %186 = arith.divf %184, %185 : vector<2x32xf32>
    %187 = arith.addf %162, %153 : vector<2x32xf32>
    %188 = arith.mulf %178, %187 : vector<2x32xf32>
    %189 = arith.mulf %172, %180 : vector<2x32xf32>
    %190 = arith.addf %188, %189 : vector<2x32xf32>
    %191 = math.tanh %190 : vector<2x32xf32>
    %192 = arith.mulf %186, %191 : vector<2x32xf32>
    %193 = arith.index_cast %160 : i32 to index
    %c0_56 = arith.constant 0 : index
    %194 = vector.load %arg5[%193, %c0_56] : memref<32x32xf32, #tpu.memory_space<vmem>>, vector<2x32xf32>
    tpu.vector_store %arg5[%193, %c0_56], %192 {strides = array<i32>} : memref<32x32xf32, #tpu.memory_space<vmem>>, vector<2x32xf32>,
    %195 = arith.index_cast %160 : i32 to index
    %c0_57 = arith.constant 0 : index
    %196 = vector.load %arg6[%195, %c0_57] : memref<32x32xf32, #tpu.memory_space<vmem>>, vector<2x32xf32>
    tpu.vector_store %arg6[%195, %c0_57], %190 {strides = array<i32>} : memref<32x32xf32, #tpu.memory_space<vmem>>, vector<2x32xf32>,
    %c5_i32 = arith.constant 5 : i32
    %c2_i32_58 = arith.constant 2 : i32
    %197 = arith.muli %c5_i32, %c2_i32_58 : i32
    %198 = arith.index_cast %197 : i32 to index
    %c0_59 = arith.constant 0 : index
    %199 = vector.load %arg6[%198, %c0_59] : memref<32x32xf32, #tpu.memory_space<vmem>>, vector<2x32xf32>
    %200 = arith.index_cast %197 : i32 to index
    %c0_60 = arith.constant 0 : index
    %201 = vector.load %arg7[%200, %c0_60] : memref<32x128xf32, #tpu.memory_space<vmem>>, vector<2x128xf32>
    %cst_61 = arith.constant dense<0.000000e+00> : vector<2x128xf32>
    %202 = tpu.matmul %192, %10, %cst_61 {dimension_numbers = #tpu.dot_dimension_numbers<[1], [0], [0], [1], [0, 0, 1, 1], [], []>} : vector<2x32xf32>, vector<32x128xf32>, vector<2x128xf32> -> vector<2x128xf32>
    %203 = arith.addf %201, %202 : vector<2x128xf32>
    %204 = vector.extract_strided_slice %203 {offsets = [0, 0], sizes = [2, 32], strides = [1, 1]} : vector<2x128xf32> to vector<2x32xf32>
    %205 = arith.negf %204 : vector<2x32xf32>
    %206 = math.exp %205 : vector<2x32xf32>
    %cst_62 = arith.constant 1.000000e+00 : f32
    %207 = vector.broadcast %cst_62 : f32 to vector<2x32xf32>
    %208 = arith.addf %207, %206 : vector<2x32xf32>
    %209 = arith.divf %207, %208 : vector<2x32xf32>
    %210 = vector.extract_strided_slice %203 {offsets = [0, 32], sizes = [2, 32], strides = [1, 1]} : vector<2x128xf32> to vector<2x32xf32>
    %211 = arith.negf %210 : vector<2x32xf32>
    %212 = math.exp %211 : vector<2x32xf32>
    %cst_63 = arith.constant 1.000000e+00 : f32
    %213 = vector.broadcast %cst_63 : f32 to vector<2x32xf32>
    %214 = arith.addf %213, %212 : vector<2x32xf32>
    %215 = arith.divf %213, %214 : vector<2x32xf32>
    %216 = vector.extract_strided_slice %203 {offsets = [0, 64], sizes = [2, 32], strides = [1, 1]} : vector<2x128xf32> to vector<2x32xf32>
    %217 = math.tanh %216 : vector<2x32xf32>
    %218 = vector.extract_strided_slice %203 {offsets = [0, 96], sizes = [2, 32], strides = [1, 1]} : vector<2x128xf32> to vector<2x32xf32>
    %219 = arith.negf %218 : vector<2x32xf32>
    %220 = math.exp %219 : vector<2x32xf32>
    %cst_64 = arith.constant 1.000000e+00 : f32
    %221 = vector.broadcast %cst_64 : f32 to vector<2x32xf32>
    %222 = arith.addf %221, %220 : vector<2x32xf32>
    %223 = arith.divf %221, %222 : vector<2x32xf32>
    %224 = arith.addf %199, %190 : vector<2x32xf32>
    %225 = arith.mulf %215, %224 : vector<2x32xf32>
    %226 = arith.mulf %209, %217 : vector<2x32xf32>
    %227 = arith.addf %225, %226 : vector<2x32xf32>
    %228 = math.tanh %227 : vector<2x32xf32>
    %229 = arith.mulf %223, %228 : vector<2x32xf32>
    %230 = arith.index_cast %197 : i32 to index
    %c0_65 = arith.constant 0 : index
    %231 = vector.load %arg5[%230, %c0_65] : memref<32x32xf32, #tpu.memory_space<vmem>>, vector<2x32xf32>
    tpu.vector_store %arg5[%230, %c0_65], %229 {strides = array<i32>} : memref<32x32xf32, #tpu.memory_space<vmem>>, vector<2x32xf32>,
    %232 = arith.index_cast %197 : i32 to index
    %c0_66 = arith.constant 0 : index
    %233 = vector.load %arg6[%232, %c0_66] : memref<32x32xf32, #tpu.memory_space<vmem>>, vector<2x32xf32>
    tpu.vector_store %arg6[%232, %c0_66], %227 {strides = array<i32>} : memref<32x32xf32, #tpu.memory_space<vmem>>, vector<2x32xf32>,
    %c6_i32 = arith.constant 6 : i32
    %c2_i32_67 = arith.constant 2 : i32
    %234 = arith.muli %c6_i32, %c2_i32_67 : i32
    %235 = arith.index_cast %234 : i32 to index
    %c0_68 = arith.constant 0 : index
    %236 = vector.load %arg6[%235, %c0_68] : memref<32x32xf32, #tpu.memory_space<vmem>>, vector<2x32xf32>
    %237 = arith.index_cast %234 : i32 to index
    %c0_69 = arith.constant 0 : index
    %238 = vector.load %arg7[%237, %c0_69] : memref<32x128xf32, #tpu.memory_space<vmem>>, vector<2x128xf32>
    %cst_70 = arith.constant dense<0.000000e+00> : vector<2x128xf32>
    %239 = tpu.matmul %229, %10, %cst_70 {dimension_numbers = #tpu.dot_dimension_numbers<[1], [0], [0], [1], [0, 0, 1, 1], [], []>} : vector<2x32xf32>, vector<32x128xf32>, vector<2x128xf32> -> vector<2x128xf32>
    %240 = arith.addf %238, %239 : vector<2x128xf32>
    %241 = vector.extract_strided_slice %240 {offsets = [0, 0], sizes = [2, 32], strides = [1, 1]} : vector<2x128xf32> to vector<2x32xf32>
    %242 = arith.negf %241 : vector<2x32xf32>
    %243 = math.exp %242 : vector<2x32xf32>
    %cst_71 = arith.constant 1.000000e+00 : f32
    %244 = vector.broadcast %cst_71 : f32 to vector<2x32xf32>
    %245 = arith.addf %244, %243 : vector<2x32xf32>
    %246 = arith.divf %244, %245 : vector<2x32xf32>
    %247 = vector.extract_strided_slice %240 {offsets = [0, 32], sizes = [2, 32], strides = [1, 1]} : vector<2x128xf32> to vector<2x32xf32>
    %248 = arith.negf %247 : vector<2x32xf32>
    %249 = math.exp %248 : vector<2x32xf32>
    %cst_72 = arith.constant 1.000000e+00 : f32
    %250 = vector.broadcast %cst_72 : f32 to vector<2x32xf32>
    %251 = arith.addf %250, %249 : vector<2x32xf32>
    %252 = arith.divf %250, %251 : vector<2x32xf32>
    %253 = vector.extract_strided_slice %240 {offsets = [0, 64], sizes = [2, 32], strides = [1, 1]} : vector<2x128xf32> to vector<2x32xf32>
    %254 = math.tanh %253 : vector<2x32xf32>
    %255 = vector.extract_strided_slice %240 {offsets = [0, 96], sizes = [2, 32], strides = [1, 1]} : vector<2x128xf32> to vector<2x32xf32>
    %256 = arith.negf %255 : vector<2x32xf32>
    %257 = math.exp %256 : vector<2x32xf32>
    %cst_73 = arith.constant 1.000000e+00 : f32
    %258 = vector.broadcast %cst_73 : f32 to vector<2x32xf32>
    %259 = arith.addf %258, %257 : vector<2x32xf32>
    %260 = arith.divf %258, %259 : vector<2x32xf32>
    %261 = arith.addf %236, %227 : vector<2x32xf32>
    %262 = arith.mulf %252, %261 : vector<2x32xf32>
    %263 = arith.mulf %246, %254 : vector<2x32xf32>
    %264 = arith.addf %262, %263 : vector<2x32xf32>
    %265 = math.tanh %264 : vector<2x32xf32>
    %266 = arith.mulf %260, %265 : vector<2x32xf32>
    %267 = arith.index_cast %234 : i32 to index
    %c0_74 = arith.constant 0 : index
    %268 = vector.load %arg5[%267, %c0_74] : memref<32x32xf32, #tpu.memory_space<vmem>>, vector<2x32xf32>
    tpu.vector_store %arg5[%267, %c0_74], %266 {strides = array<i32>} : memref<32x32xf32, #tpu.memory_space<vmem>>, vector<2x32xf32>,
    %269 = arith.index_cast %234 : i32 to index
    %c0_75 = arith.constant 0 : index
    %270 = vector.load %arg6[%269, %c0_75] : memref<32x32xf32, #tpu.memory_space<vmem>>, vector<2x32xf32>
    tpu.vector_store %arg6[%269, %c0_75], %264 {strides = array<i32>} : memref<32x32xf32, #tpu.memory_space<vmem>>, vector<2x32xf32>,
    %c7_i32 = arith.constant 7 : i32
    %c2_i32_76 = arith.constant 2 : i32
    %271 = arith.muli %c7_i32, %c2_i32_76 : i32
    %272 = arith.index_cast %271 : i32 to index
    %c0_77 = arith.constant 0 : index
    %273 = vector.load %arg6[%272, %c0_77] : memref<32x32xf32, #tpu.memory_space<vmem>>, vector<2x32xf32>
    %274 = arith.index_cast %271 : i32 to index
    %c0_78 = arith.constant 0 : index
    %275 = vector.load %arg7[%274, %c0_78] : memref<32x128xf32, #tpu.memory_space<vmem>>, vector<2x128xf32>
    %cst_79 = arith.constant dense<0.000000e+00> : vector<2x128xf32>
    %276 = tpu.matmul %266, %10, %cst_79 {dimension_numbers = #tpu.dot_dimension_numbers<[1], [0], [0], [1], [0, 0, 1, 1], [], []>} : vector<2x32xf32>, vector<32x128xf32>, vector<2x128xf32> -> vector<2x128xf32>
    %277 = arith.addf %275, %276 : vector<2x128xf32>
    %278 = vector.extract_strided_slice %277 {offsets = [0, 0], sizes = [2, 32], strides = [1, 1]} : vector<2x128xf32> to vector<2x32xf32>
    %279 = arith.negf %278 : vector<2x32xf32>
    %280 = math.exp %279 : vector<2x32xf32>
    %cst_80 = arith.constant 1.000000e+00 : f32
    %281 = vector.broadcast %cst_80 : f32 to vector<2x32xf32>
    %282 = arith.addf %281, %280 : vector<2x32xf32>
    %283 = arith.divf %281, %282 : vector<2x32xf32>
    %284 = vector.extract_strided_slice %277 {offsets = [0, 32], sizes = [2, 32], strides = [1, 1]} : vector<2x128xf32> to vector<2x32xf32>
    %285 = arith.negf %284 : vector<2x32xf32>
    %286 = math.exp %285 : vector<2x32xf32>
    %cst_81 = arith.constant 1.000000e+00 : f32
    %287 = vector.broadcast %cst_81 : f32 to vector<2x32xf32>
    %288 = arith.addf %287, %286 : vector<2x32xf32>
    %289 = arith.divf %287, %288 : vector<2x32xf32>
    %290 = vector.extract_strided_slice %277 {offsets = [0, 64], sizes = [2, 32], strides = [1, 1]} : vector<2x128xf32> to vector<2x32xf32>
    %291 = math.tanh %290 : vector<2x32xf32>
    %292 = vector.extract_strided_slice %277 {offsets = [0, 96], sizes = [2, 32], strides = [1, 1]} : vector<2x128xf32> to vector<2x32xf32>
    %293 = arith.negf %292 : vector<2x32xf32>
    %294 = math.exp %293 : vector<2x32xf32>
    %cst_82 = arith.constant 1.000000e+00 : f32
    %295 = vector.broadcast %cst_82 : f32 to vector<2x32xf32>
    %296 = arith.addf %295, %294 : vector<2x32xf32>
    %297 = arith.divf %295, %296 : vector<2x32xf32>
    %298 = arith.addf %273, %264 : vector<2x32xf32>
    %299 = arith.mulf %289, %298 : vector<2x32xf32>
    %300 = arith.mulf %283, %291 : vector<2x32xf32>
    %301 = arith.addf %299, %300 : vector<2x32xf32>
    %302 = math.tanh %301 : vector<2x32xf32>
    %303 = arith.mulf %297, %302 : vector<2x32xf32>
    %304 = arith.index_cast %271 : i32 to index
    %c0_83 = arith.constant 0 : index
    %305 = vector.load %arg5[%304, %c0_83] : memref<32x32xf32, #tpu.memory_space<vmem>>, vector<2x32xf32>
    tpu.vector_store %arg5[%304, %c0_83], %303 {strides = array<i32>} : memref<32x32xf32, #tpu.memory_space<vmem>>, vector<2x32xf32>,
    %306 = arith.index_cast %271 : i32 to index
    %c0_84 = arith.constant 0 : index
    %307 = vector.load %arg6[%306, %c0_84] : memref<32x32xf32, #tpu.memory_space<vmem>>, vector<2x32xf32>
    tpu.vector_store %arg6[%306, %c0_84], %301 {strides = array<i32>} : memref<32x32xf32, #tpu.memory_space<vmem>>, vector<2x32xf32>,
    %c8_i32 = arith.constant 8 : i32
    %c2_i32_85 = arith.constant 2 : i32
    %308 = arith.muli %c8_i32, %c2_i32_85 : i32
    %309 = arith.index_cast %308 : i32 to index
    %c0_86 = arith.constant 0 : index
    %310 = vector.load %arg6[%309, %c0_86] : memref<32x32xf32, #tpu.memory_space<vmem>>, vector<2x32xf32>
    %311 = arith.index_cast %308 : i32 to index
    %c0_87 = arith.constant 0 : index
    %312 = vector.load %arg7[%311, %c0_87] : memref<32x128xf32, #tpu.memory_space<vmem>>, vector<2x128xf32>
    %cst_88 = arith.constant dense<0.000000e+00> : vector<2x128xf32>
    %313 = tpu.matmul %303, %10, %cst_88 {dimension_numbers = #tpu.dot_dimension_numbers<[1], [0], [0], [1], [0, 0, 1, 1], [], []>} : vector<2x32xf32>, vector<32x128xf32>, vector<2x128xf32> -> vector<2x128xf32>
    %314 = arith.addf %312, %313 : vector<2x128xf32>
    %315 = vector.extract_strided_slice %314 {offsets = [0, 0], sizes = [2, 32], strides = [1, 1]} : vector<2x128xf32> to vector<2x32xf32>
    %316 = arith.negf %315 : vector<2x32xf32>
    %317 = math.exp %316 : vector<2x32xf32>
    %cst_89 = arith.constant 1.000000e+00 : f32
    %318 = vector.broadcast %cst_89 : f32 to vector<2x32xf32>
    %319 = arith.addf %318, %317 : vector<2x32xf32>
    %320 = arith.divf %318, %319 : vector<2x32xf32>
    %321 = vector.extract_strided_slice %314 {offsets = [0, 32], sizes = [2, 32], strides = [1, 1]} : vector<2x128xf32> to vector<2x32xf32>
    %322 = arith.negf %321 : vector<2x32xf32>
    %323 = math.exp %322 : vector<2x32xf32>
    %cst_90 = arith.constant 1.000000e+00 : f32
    %324 = vector.broadcast %cst_90 : f32 to vector<2x32xf32>
    %325 = arith.addf %324, %323 : vector<2x32xf32>
    %326 = arith.divf %324, %325 : vector<2x32xf32>
    %327 = vector.extract_strided_slice %314 {offsets = [0, 64], sizes = [2, 32], strides = [1, 1]} : vector<2x128xf32> to vector<2x32xf32>
    %328 = math.tanh %327 : vector<2x32xf32>
    %329 = vector.extract_strided_slice %314 {offsets = [0, 96], sizes = [2, 32], strides = [1, 1]} : vector<2x128xf32> to vector<2x32xf32>
    %330 = arith.negf %329 : vector<2x32xf32>
    %331 = math.exp %330 : vector<2x32xf32>
    %cst_91 = arith.constant 1.000000e+00 : f32
    %332 = vector.broadcast %cst_91 : f32 to vector<2x32xf32>
    %333 = arith.addf %332, %331 : vector<2x32xf32>
    %334 = arith.divf %332, %333 : vector<2x32xf32>
    %335 = arith.addf %310, %301 : vector<2x32xf32>
    %336 = arith.mulf %326, %335 : vector<2x32xf32>
    %337 = arith.mulf %320, %328 : vector<2x32xf32>
    %338 = arith.addf %336, %337 : vector<2x32xf32>
    %339 = math.tanh %338 : vector<2x32xf32>
    %340 = arith.mulf %334, %339 : vector<2x32xf32>
    %341 = arith.index_cast %308 : i32 to index
    %c0_92 = arith.constant 0 : index
    %342 = vector.load %arg5[%341, %c0_92] : memref<32x32xf32, #tpu.memory_space<vmem>>, vector<2x32xf32>
    tpu.vector_store %arg5[%341, %c0_92], %340 {strides = array<i32>} : memref<32x32xf32, #tpu.memory_space<vmem>>, vector<2x32xf32>,
    %343 = arith.index_cast %308 : i32 to index
    %c0_93 = arith.constant 0 : index
    %344 = vector.load %arg6[%343, %c0_93] : memref<32x32xf32, #tpu.memory_space<vmem>>, vector<2x32xf32>
    tpu.vector_store %arg6[%343, %c0_93], %338 {strides = array<i32>} : memref<32x32xf32, #tpu.memory_space<vmem>>, vector<2x32xf32>,
    %c9_i32 = arith.constant 9 : i32
    %c2_i32_94 = arith.constant 2 : i32
    %345 = arith.muli %c9_i32, %c2_i32_94 : i32
    %346 = arith.index_cast %345 : i32 to index
    %c0_95 = arith.constant 0 : index
    %347 = vector.load %arg6[%346, %c0_95] : memref<32x32xf32, #tpu.memory_space<vmem>>, vector<2x32xf32>
    %348 = arith.index_cast %345 : i32 to index
    %c0_96 = arith.constant 0 : index
    %349 = vector.load %arg7[%348, %c0_96] : memref<32x128xf32, #tpu.memory_space<vmem>>, vector<2x128xf32>
    %cst_97 = arith.constant dense<0.000000e+00> : vector<2x128xf32>
    %350 = tpu.matmul %340, %10, %cst_97 {dimension_numbers = #tpu.dot_dimension_numbers<[1], [0], [0], [1], [0, 0, 1, 1], [], []>} : vector<2x32xf32>, vector<32x128xf32>, vector<2x128xf32> -> vector<2x128xf32>
    %351 = arith.addf %349, %350 : vector<2x128xf32>
    %352 = vector.extract_strided_slice %351 {offsets = [0, 0], sizes = [2, 32], strides = [1, 1]} : vector<2x128xf32> to vector<2x32xf32>
    %353 = arith.negf %352 : vector<2x32xf32>
    %354 = math.exp %353 : vector<2x32xf32>
    %cst_98 = arith.constant 1.000000e+00 : f32
    %355 = vector.broadcast %cst_98 : f32 to vector<2x32xf32>
    %356 = arith.addf %355, %354 : vector<2x32xf32>
    %357 = arith.divf %355, %356 : vector<2x32xf32>
    %358 = vector.extract_strided_slice %351 {offsets = [0, 32], sizes = [2, 32], strides = [1, 1]} : vector<2x128xf32> to vector<2x32xf32>
    %359 = arith.negf %358 : vector<2x32xf32>
    %360 = math.exp %359 : vector<2x32xf32>
    %cst_99 = arith.constant 1.000000e+00 : f32
    %361 = vector.broadcast %cst_99 : f32 to vector<2x32xf32>
    %362 = arith.addf %361, %360 : vector<2x32xf32>
    %363 = arith.divf %361, %362 : vector<2x32xf32>
    %364 = vector.extract_strided_slice %351 {offsets = [0, 64], sizes = [2, 32], strides = [1, 1]} : vector<2x128xf32> to vector<2x32xf32>
    %365 = math.tanh %364 : vector<2x32xf32>
    %366 = vector.extract_strided_slice %351 {offsets = [0, 96], sizes = [2, 32], strides = [1, 1]} : vector<2x128xf32> to vector<2x32xf32>
    %367 = arith.negf %366 : vector<2x32xf32>
    %368 = math.exp %367 : vector<2x32xf32>
    %cst_100 = arith.constant 1.000000e+00 : f32
    %369 = vector.broadcast %cst_100 : f32 to vector<2x32xf32>
    %370 = arith.addf %369, %368 : vector<2x32xf32>
    %371 = arith.divf %369, %370 : vector<2x32xf32>
    %372 = arith.addf %347, %338 : vector<2x32xf32>
    %373 = arith.mulf %363, %372 : vector<2x32xf32>
    %374 = arith.mulf %357, %365 : vector<2x32xf32>
    %375 = arith.addf %373, %374 : vector<2x32xf32>
    %376 = math.tanh %375 : vector<2x32xf32>
    %377 = arith.mulf %371, %376 : vector<2x32xf32>
    %378 = arith.index_cast %345 : i32 to index
    %c0_101 = arith.constant 0 : index
    %379 = vector.load %arg5[%378, %c0_101] : memref<32x32xf32, #tpu.memory_space<vmem>>, vector<2x32xf32>
    tpu.vector_store %arg5[%378, %c0_101], %377 {strides = array<i32>} : memref<32x32xf32, #tpu.memory_space<vmem>>, vector<2x32xf32>,
    %380 = arith.index_cast %345 : i32 to index
    %c0_102 = arith.constant 0 : index
    %381 = vector.load %arg6[%380, %c0_102] : memref<32x32xf32, #tpu.memory_space<vmem>>, vector<2x32xf32>
    tpu.vector_store %arg6[%380, %c0_102], %375 {strides = array<i32>} : memref<32x32xf32, #tpu.memory_space<vmem>>, vector<2x32xf32>,
    %c10_i32 = arith.constant 10 : i32
    %c2_i32_103 = arith.constant 2 : i32
    %382 = arith.muli %c10_i32, %c2_i32_103 : i32
    %383 = arith.index_cast %382 : i32 to index
    %c0_104 = arith.constant 0 : index
    %384 = vector.load %arg6[%383, %c0_104] : memref<32x32xf32, #tpu.memory_space<vmem>>, vector<2x32xf32>
    %385 = arith.index_cast %382 : i32 to index
    %c0_105 = arith.constant 0 : index
    %386 = vector.load %arg7[%385, %c0_105] : memref<32x128xf32, #tpu.memory_space<vmem>>, vector<2x128xf32>
    %cst_106 = arith.constant dense<0.000000e+00> : vector<2x128xf32>
    %387 = tpu.matmul %377, %10, %cst_106 {dimension_numbers = #tpu.dot_dimension_numbers<[1], [0], [0], [1], [0, 0, 1, 1], [], []>} : vector<2x32xf32>, vector<32x128xf32>, vector<2x128xf32> -> vector<2x128xf32>
    %388 = arith.addf %386, %387 : vector<2x128xf32>
    %389 = vector.extract_strided_slice %388 {offsets = [0, 0], sizes = [2, 32], strides = [1, 1]} : vector<2x128xf32> to vector<2x32xf32>
    %390 = arith.negf %389 : vector<2x32xf32>
    %391 = math.exp %390 : vector<2x32xf32>
    %cst_107 = arith.constant 1.000000e+00 : f32
    %392 = vector.broadcast %cst_107 : f32 to vector<2x32xf32>
    %393 = arith.addf %392, %391 : vector<2x32xf32>
    %394 = arith.divf %392, %393 : vector<2x32xf32>
    %395 = vector.extract_strided_slice %388 {offsets = [0, 32], sizes = [2, 32], strides = [1, 1]} : vector<2x128xf32> to vector<2x32xf32>
    %396 = arith.negf %395 : vector<2x32xf32>
    %397 = math.exp %396 : vector<2x32xf32>
    %cst_108 = arith.constant 1.000000e+00 : f32
    %398 = vector.broadcast %cst_108 : f32 to vector<2x32xf32>
    %399 = arith.addf %398, %397 : vector<2x32xf32>
    %400 = arith.divf %398, %399 : vector<2x32xf32>
    %401 = vector.extract_strided_slice %388 {offsets = [0, 64], sizes = [2, 32], strides = [1, 1]} : vector<2x128xf32> to vector<2x32xf32>
    %402 = math.tanh %401 : vector<2x32xf32>
    %403 = vector.extract_strided_slice %388 {offsets = [0, 96], sizes = [2, 32], strides = [1, 1]} : vector<2x128xf32> to vector<2x32xf32>
    %404 = arith.negf %403 : vector<2x32xf32>
    %405 = math.exp %404 : vector<2x32xf32>
    %cst_109 = arith.constant 1.000000e+00 : f32
    %406 = vector.broadcast %cst_109 : f32 to vector<2x32xf32>
    %407 = arith.addf %406, %405 : vector<2x32xf32>
    %408 = arith.divf %406, %407 : vector<2x32xf32>
    %409 = arith.addf %384, %375 : vector<2x32xf32>
    %410 = arith.mulf %400, %409 : vector<2x32xf32>
    %411 = arith.mulf %394, %402 : vector<2x32xf32>
    %412 = arith.addf %410, %411 : vector<2x32xf32>
    %413 = math.tanh %412 : vector<2x32xf32>
    %414 = arith.mulf %408, %413 : vector<2x32xf32>
    %415 = arith.index_cast %382 : i32 to index
    %c0_110 = arith.constant 0 : index
    %416 = vector.load %arg5[%415, %c0_110] : memref<32x32xf32, #tpu.memory_space<vmem>>, vector<2x32xf32>
    tpu.vector_store %arg5[%415, %c0_110], %414 {strides = array<i32>} : memref<32x32xf32, #tpu.memory_space<vmem>>, vector<2x32xf32>,
    %417 = arith.index_cast %382 : i32 to index
    %c0_111 = arith.constant 0 : index
    %418 = vector.load %arg6[%417, %c0_111] : memref<32x32xf32, #tpu.memory_space<vmem>>, vector<2x32xf32>
    tpu.vector_store %arg6[%417, %c0_111], %412 {strides = array<i32>} : memref<32x32xf32, #tpu.memory_space<vmem>>, vector<2x32xf32>,
    %c11_i32 = arith.constant 11 : i32
    %c2_i32_112 = arith.constant 2 : i32
    %419 = arith.muli %c11_i32, %c2_i32_112 : i32
    %420 = arith.index_cast %419 : i32 to index
    %c0_113 = arith.constant 0 : index
    %421 = vector.load %arg6[%420, %c0_113] : memref<32x32xf32, #tpu.memory_space<vmem>>, vector<2x32xf32>
    %422 = arith.index_cast %419 : i32 to index
    %c0_114 = arith.constant 0 : index
    %423 = vector.load %arg7[%422, %c0_114] : memref<32x128xf32, #tpu.memory_space<vmem>>, vector<2x128xf32>
    %cst_115 = arith.constant dense<0.000000e+00> : vector<2x128xf32>
    %424 = tpu.matmul %414, %10, %cst_115 {dimension_numbers = #tpu.dot_dimension_numbers<[1], [0], [0], [1], [0, 0, 1, 1], [], []>} : vector<2x32xf32>, vector<32x128xf32>, vector<2x128xf32> -> vector<2x128xf32>
    %425 = arith.addf %423, %424 : vector<2x128xf32>
    %426 = vector.extract_strided_slice %425 {offsets = [0, 0], sizes = [2, 32], strides = [1, 1]} : vector<2x128xf32> to vector<2x32xf32>
    %427 = arith.negf %426 : vector<2x32xf32>
    %428 = math.exp %427 : vector<2x32xf32>
    %cst_116 = arith.constant 1.000000e+00 : f32
    %429 = vector.broadcast %cst_116 : f32 to vector<2x32xf32>
    %430 = arith.addf %429, %428 : vector<2x32xf32>
    %431 = arith.divf %429, %430 : vector<2x32xf32>
    %432 = vector.extract_strided_slice %425 {offsets = [0, 32], sizes = [2, 32], strides = [1, 1]} : vector<2x128xf32> to vector<2x32xf32>
    %433 = arith.negf %432 : vector<2x32xf32>
    %434 = math.exp %433 : vector<2x32xf32>
    %cst_117 = arith.constant 1.000000e+00 : f32
    %435 = vector.broadcast %cst_117 : f32 to vector<2x32xf32>
    %436 = arith.addf %435, %434 : vector<2x32xf32>
    %437 = arith.divf %435, %436 : vector<2x32xf32>
    %438 = vector.extract_strided_slice %425 {offsets = [0, 64], sizes = [2, 32], strides = [1, 1]} : vector<2x128xf32> to vector<2x32xf32>
    %439 = math.tanh %438 : vector<2x32xf32>
    %440 = vector.extract_strided_slice %425 {offsets = [0, 96], sizes = [2, 32], strides = [1, 1]} : vector<2x128xf32> to vector<2x32xf32>
    %441 = arith.negf %440 : vector<2x32xf32>
    %442 = math.exp %441 : vector<2x32xf32>
    %cst_118 = arith.constant 1.000000e+00 : f32
    %443 = vector.broadcast %cst_118 : f32 to vector<2x32xf32>
    %444 = arith.addf %443, %442 : vector<2x32xf32>
    %445 = arith.divf %443, %444 : vector<2x32xf32>
    %446 = arith.addf %421, %412 : vector<2x32xf32>
    %447 = arith.mulf %437, %446 : vector<2x32xf32>
    %448 = arith.mulf %431, %439 : vector<2x32xf32>
    %449 = arith.addf %447, %448 : vector<2x32xf32>
    %450 = math.tanh %449 : vector<2x32xf32>
    %451 = arith.mulf %445, %450 : vector<2x32xf32>
    %452 = arith.index_cast %419 : i32 to index
    %c0_119 = arith.constant 0 : index
    %453 = vector.load %arg5[%452, %c0_119] : memref<32x32xf32, #tpu.memory_space<vmem>>, vector<2x32xf32>
    tpu.vector_store %arg5[%452, %c0_119], %451 {strides = array<i32>} : memref<32x32xf32, #tpu.memory_space<vmem>>, vector<2x32xf32>,
    %454 = arith.index_cast %419 : i32 to index
    %c0_120 = arith.constant 0 : index
    %455 = vector.load %arg6[%454, %c0_120] : memref<32x32xf32, #tpu.memory_space<vmem>>, vector<2x32xf32>
    tpu.vector_store %arg6[%454, %c0_120], %449 {strides = array<i32>} : memref<32x32xf32, #tpu.memory_space<vmem>>, vector<2x32xf32>,
    %c12_i32 = arith.constant 12 : i32
    %c2_i32_121 = arith.constant 2 : i32
    %456 = arith.muli %c12_i32, %c2_i32_121 : i32
    %457 = arith.index_cast %456 : i32 to index
    %c0_122 = arith.constant 0 : index
    %458 = vector.load %arg6[%457, %c0_122] : memref<32x32xf32, #tpu.memory_space<vmem>>, vector<2x32xf32>
    %459 = arith.index_cast %456 : i32 to index
    %c0_123 = arith.constant 0 : index
    %460 = vector.load %arg7[%459, %c0_123] : memref<32x128xf32, #tpu.memory_space<vmem>>, vector<2x128xf32>
    %cst_124 = arith.constant dense<0.000000e+00> : vector<2x128xf32>
    %461 = tpu.matmul %451, %10, %cst_124 {dimension_numbers = #tpu.dot_dimension_numbers<[1], [0], [0], [1], [0, 0, 1, 1], [], []>} : vector<2x32xf32>, vector<32x128xf32>, vector<2x128xf32> -> vector<2x128xf32>
    %462 = arith.addf %460, %461 : vector<2x128xf32>
    %463 = vector.extract_strided_slice %462 {offsets = [0, 0], sizes = [2, 32], strides = [1, 1]} : vector<2x128xf32> to vector<2x32xf32>
    %464 = arith.negf %463 : vector<2x32xf32>
    %465 = math.exp %464 : vector<2x32xf32>
    %cst_125 = arith.constant 1.000000e+00 : f32
    %466 = vector.broadcast %cst_125 : f32 to vector<2x32xf32>
    %467 = arith.addf %466, %465 : vector<2x32xf32>
    %468 = arith.divf %466, %467 : vector<2x32xf32>
    %469 = vector.extract_strided_slice %462 {offsets = [0, 32], sizes = [2, 32], strides = [1, 1]} : vector<2x128xf32> to vector<2x32xf32>
    %470 = arith.negf %469 : vector<2x32xf32>
    %471 = math.exp %470 : vector<2x32xf32>
    %cst_126 = arith.constant 1.000000e+00 : f32
    %472 = vector.broadcast %cst_126 : f32 to vector<2x32xf32>
    %473 = arith.addf %472, %471 : vector<2x32xf32>
    %474 = arith.divf %472, %473 : vector<2x32xf32>
    %475 = vector.extract_strided_slice %462 {offsets = [0, 64], sizes = [2, 32], strides = [1, 1]} : vector<2x128xf32> to vector<2x32xf32>
    %476 = math.tanh %475 : vector<2x32xf32>
    %477 = vector.extract_strided_slice %462 {offsets = [0, 96], sizes = [2, 32], strides = [1, 1]} : vector<2x128xf32> to vector<2x32xf32>
    %478 = arith.negf %477 : vector<2x32xf32>
    %479 = math.exp %478 : vector<2x32xf32>
    %cst_127 = arith.constant 1.000000e+00 : f32
    %480 = vector.broadcast %cst_127 : f32 to vector<2x32xf32>
    %481 = arith.addf %480, %479 : vector<2x32xf32>
    %482 = arith.divf %480, %481 : vector<2x32xf32>
    %483 = arith.addf %458, %449 : vector<2x32xf32>
    %484 = arith.mulf %474, %483 : vector<2x32xf32>
    %485 = arith.mulf %468, %476 : vector<2x32xf32>
    %486 = arith.addf %484, %485 : vector<2x32xf32>
    %487 = math.tanh %486 : vector<2x32xf32>
    %488 = arith.mulf %482, %487 : vector<2x32xf32>
    %489 = arith.index_cast %456 : i32 to index
    %c0_128 = arith.constant 0 : index
    %490 = vector.load %arg5[%489, %c0_128] : memref<32x32xf32, #tpu.memory_space<vmem>>, vector<2x32xf32>
    tpu.vector_store %arg5[%489, %c0_128], %488 {strides = array<i32>} : memref<32x32xf32, #tpu.memory_space<vmem>>, vector<2x32xf32>,
    %491 = arith.index_cast %456 : i32 to index
    %c0_129 = arith.constant 0 : index
    %492 = vector.load %arg6[%491, %c0_129] : memref<32x32xf32, #tpu.memory_space<vmem>>, vector<2x32xf32>
    tpu.vector_store %arg6[%491, %c0_129], %486 {strides = array<i32>} : memref<32x32xf32, #tpu.memory_space<vmem>>, vector<2x32xf32>,
    %c13_i32 = arith.constant 13 : i32
    %c2_i32_130 = arith.constant 2 : i32
    %493 = arith.muli %c13_i32, %c2_i32_130 : i32
    %494 = arith.index_cast %493 : i32 to index
    %c0_131 = arith.constant 0 : index
    %495 = vector.load %arg6[%494, %c0_131] : memref<32x32xf32, #tpu.memory_space<vmem>>, vector<2x32xf32>
    %496 = arith.index_cast %493 : i32 to index
    %c0_132 = arith.constant 0 : index
    %497 = vector.load %arg7[%496, %c0_132] : memref<32x128xf32, #tpu.memory_space<vmem>>, vector<2x128xf32>
    %cst_133 = arith.constant dense<0.000000e+00> : vector<2x128xf32>
    %498 = tpu.matmul %488, %10, %cst_133 {dimension_numbers = #tpu.dot_dimension_numbers<[1], [0], [0], [1], [0, 0, 1, 1], [], []>} : vector<2x32xf32>, vector<32x128xf32>, vector<2x128xf32> -> vector<2x128xf32>
    %499 = arith.addf %497, %498 : vector<2x128xf32>
    %500 = vector.extract_strided_slice %499 {offsets = [0, 0], sizes = [2, 32], strides = [1, 1]} : vector<2x128xf32> to vector<2x32xf32>
    %501 = arith.negf %500 : vector<2x32xf32>
    %502 = math.exp %501 : vector<2x32xf32>
    %cst_134 = arith.constant 1.000000e+00 : f32
    %503 = vector.broadcast %cst_134 : f32 to vector<2x32xf32>
    %504 = arith.addf %503, %502 : vector<2x32xf32>
    %505 = arith.divf %503, %504 : vector<2x32xf32>
    %506 = vector.extract_strided_slice %499 {offsets = [0, 32], sizes = [2, 32], strides = [1, 1]} : vector<2x128xf32> to vector<2x32xf32>
    %507 = arith.negf %506 : vector<2x32xf32>
    %508 = math.exp %507 : vector<2x32xf32>
    %cst_135 = arith.constant 1.000000e+00 : f32
    %509 = vector.broadcast %cst_135 : f32 to vector<2x32xf32>
    %510 = arith.addf %509, %508 : vector<2x32xf32>
    %511 = arith.divf %509, %510 : vector<2x32xf32>
    %512 = vector.extract_strided_slice %499 {offsets = [0, 64], sizes = [2, 32], strides = [1, 1]} : vector<2x128xf32> to vector<2x32xf32>
    %513 = math.tanh %512 : vector<2x32xf32>
    %514 = vector.extract_strided_slice %499 {offsets = [0, 96], sizes = [2, 32], strides = [1, 1]} : vector<2x128xf32> to vector<2x32xf32>
    %515 = arith.negf %514 : vector<2x32xf32>
    %516 = math.exp %515 : vector<2x32xf32>
    %cst_136 = arith.constant 1.000000e+00 : f32
    %517 = vector.broadcast %cst_136 : f32 to vector<2x32xf32>
    %518 = arith.addf %517, %516 : vector<2x32xf32>
    %519 = arith.divf %517, %518 : vector<2x32xf32>
    %520 = arith.addf %495, %486 : vector<2x32xf32>
    %521 = arith.mulf %511, %520 : vector<2x32xf32>
    %522 = arith.mulf %505, %513 : vector<2x32xf32>
    %523 = arith.addf %521, %522 : vector<2x32xf32>
    %524 = math.tanh %523 : vector<2x32xf32>
    %525 = arith.mulf %519, %524 : vector<2x32xf32>
    %526 = arith.index_cast %493 : i32 to index
    %c0_137 = arith.constant 0 : index
    %527 = vector.load %arg5[%526, %c0_137] : memref<32x32xf32, #tpu.memory_space<vmem>>, vector<2x32xf32>
    tpu.vector_store %arg5[%526, %c0_137], %525 {strides = array<i32>} : memref<32x32xf32, #tpu.memory_space<vmem>>, vector<2x32xf32>,
    %528 = arith.index_cast %493 : i32 to index
    %c0_138 = arith.constant 0 : index
    %529 = vector.load %arg6[%528, %c0_138] : memref<32x32xf32, #tpu.memory_space<vmem>>, vector<2x32xf32>
    tpu.vector_store %arg6[%528, %c0_138], %523 {strides = array<i32>} : memref<32x32xf32, #tpu.memory_space<vmem>>, vector<2x32xf32>,
    %c14_i32 = arith.constant 14 : i32
    %c2_i32_139 = arith.constant 2 : i32
    %530 = arith.muli %c14_i32, %c2_i32_139 : i32
    %531 = arith.index_cast %530 : i32 to index
    %c0_140 = arith.constant 0 : index
    %532 = vector.load %arg6[%531, %c0_140] : memref<32x32xf32, #tpu.memory_space<vmem>>, vector<2x32xf32>
    %533 = arith.index_cast %530 : i32 to index
    %c0_141 = arith.constant 0 : index
    %534 = vector.load %arg7[%533, %c0_141] : memref<32x128xf32, #tpu.memory_space<vmem>>, vector<2x128xf32>
    %cst_142 = arith.constant dense<0.000000e+00> : vector<2x128xf32>
    %535 = tpu.matmul %525, %10, %cst_142 {dimension_numbers = #tpu.dot_dimension_numbers<[1], [0], [0], [1], [0, 0, 1, 1], [], []>} : vector<2x32xf32>, vector<32x128xf32>, vector<2x128xf32> -> vector<2x128xf32>
    %536 = arith.addf %534, %535 : vector<2x128xf32>
    %537 = vector.extract_strided_slice %536 {offsets = [0, 0], sizes = [2, 32], strides = [1, 1]} : vector<2x128xf32> to vector<2x32xf32>
    %538 = arith.negf %537 : vector<2x32xf32>
    %539 = math.exp %538 : vector<2x32xf32>
    %cst_143 = arith.constant 1.000000e+00 : f32
    %540 = vector.broadcast %cst_143 : f32 to vector<2x32xf32>
    %541 = arith.addf %540, %539 : vector<2x32xf32>
    %542 = arith.divf %540, %541 : vector<2x32xf32>
    %543 = vector.extract_strided_slice %536 {offsets = [0, 32], sizes = [2, 32], strides = [1, 1]} : vector<2x128xf32> to vector<2x32xf32>
    %544 = arith.negf %543 : vector<2x32xf32>
    %545 = math.exp %544 : vector<2x32xf32>
    %cst_144 = arith.constant 1.000000e+00 : f32
    %546 = vector.broadcast %cst_144 : f32 to vector<2x32xf32>
    %547 = arith.addf %546, %545 : vector<2x32xf32>
    %548 = arith.divf %546, %547 : vector<2x32xf32>
    %549 = vector.extract_strided_slice %536 {offsets = [0, 64], sizes = [2, 32], strides = [1, 1]} : vector<2x128xf32> to vector<2x32xf32>
    %550 = math.tanh %549 : vector<2x32xf32>
    %551 = vector.extract_strided_slice %536 {offsets = [0, 96], sizes = [2, 32], strides = [1, 1]} : vector<2x128xf32> to vector<2x32xf32>
    %552 = arith.negf %551 : vector<2x32xf32>
    %553 = math.exp %552 : vector<2x32xf32>
    %cst_145 = arith.constant 1.000000e+00 : f32
    %554 = vector.broadcast %cst_145 : f32 to vector<2x32xf32>
    %555 = arith.addf %554, %553 : vector<2x32xf32>
    %556 = arith.divf %554, %555 : vector<2x32xf32>
    %557 = arith.addf %532, %523 : vector<2x32xf32>
    %558 = arith.mulf %548, %557 : vector<2x32xf32>
    %559 = arith.mulf %542, %550 : vector<2x32xf32>
    %560 = arith.addf %558, %559 : vector<2x32xf32>
    %561 = math.tanh %560 : vector<2x32xf32>
    %562 = arith.mulf %556, %561 : vector<2x32xf32>
    %563 = arith.index_cast %530 : i32 to index
    %c0_146 = arith.constant 0 : index
    %564 = vector.load %arg5[%563, %c0_146] : memref<32x32xf32, #tpu.memory_space<vmem>>, vector<2x32xf32>
    tpu.vector_store %arg5[%563, %c0_146], %562 {strides = array<i32>} : memref<32x32xf32, #tpu.memory_space<vmem>>, vector<2x32xf32>,
    %565 = arith.index_cast %530 : i32 to index
    %c0_147 = arith.constant 0 : index
    %566 = vector.load %arg6[%565, %c0_147] : memref<32x32xf32, #tpu.memory_space<vmem>>, vector<2x32xf32>
    tpu.vector_store %arg6[%565, %c0_147], %560 {strides = array<i32>} : memref<32x32xf32, #tpu.memory_space<vmem>>, vector<2x32xf32>,
    %c15_i32 = arith.constant 15 : i32
    %c2_i32_148 = arith.constant 2 : i32
    %567 = arith.muli %c15_i32, %c2_i32_148 : i32
    %568 = arith.index_cast %567 : i32 to index
    %c0_149 = arith.constant 0 : index
    %569 = vector.load %arg6[%568, %c0_149] : memref<32x32xf32, #tpu.memory_space<vmem>>, vector<2x32xf32>
    %570 = arith.index_cast %567 : i32 to index
    %c0_150 = arith.constant 0 : index
    %571 = vector.load %arg7[%570, %c0_150] : memref<32x128xf32, #tpu.memory_space<vmem>>, vector<2x128xf32>
    %cst_151 = arith.constant dense<0.000000e+00> : vector<2x128xf32>
    %572 = tpu.matmul %562, %10, %cst_151 {dimension_numbers = #tpu.dot_dimension_numbers<[1], [0], [0], [1], [0, 0, 1, 1], [], []>} : vector<2x32xf32>, vector<32x128xf32>, vector<2x128xf32> -> vector<2x128xf32>
    %573 = arith.addf %571, %572 : vector<2x128xf32>
    %574 = vector.extract_strided_slice %573 {offsets = [0, 0], sizes = [2, 32], strides = [1, 1]} : vector<2x128xf32> to vector<2x32xf32>
    %575 = arith.negf %574 : vector<2x32xf32>
    %576 = math.exp %575 : vector<2x32xf32>
    %cst_152 = arith.constant 1.000000e+00 : f32
    %577 = vector.broadcast %cst_152 : f32 to vector<2x32xf32>
    %578 = arith.addf %577, %576 : vector<2x32xf32>
    %579 = arith.divf %577, %578 : vector<2x32xf32>
    %580 = vector.extract_strided_slice %573 {offsets = [0, 32], sizes = [2, 32], strides = [1, 1]} : vector<2x128xf32> to vector<2x32xf32>
    %581 = arith.negf %580 : vector<2x32xf32>
    %582 = math.exp %581 : vector<2x32xf32>
    %cst_153 = arith.constant 1.000000e+00 : f32
    %583 = vector.broadcast %cst_153 : f32 to vector<2x32xf32>
    %584 = arith.addf %583, %582 : vector<2x32xf32>
    %585 = arith.divf %583, %584 : vector<2x32xf32>
    %586 = vector.extract_strided_slice %573 {offsets = [0, 64], sizes = [2, 32], strides = [1, 1]} : vector<2x128xf32> to vector<2x32xf32>
    %587 = math.tanh %586 : vector<2x32xf32>
    %588 = vector.extract_strided_slice %573 {offsets = [0, 96], sizes = [2, 32], strides = [1, 1]} : vector<2x128xf32> to vector<2x32xf32>
    %589 = arith.negf %588 : vector<2x32xf32>
    %590 = math.exp %589 : vector<2x32xf32>
    %cst_154 = arith.constant 1.000000e+00 : f32
    %591 = vector.broadcast %cst_154 : f32 to vector<2x32xf32>
    %592 = arith.addf %591, %590 : vector<2x32xf32>
    %593 = arith.divf %591, %592 : vector<2x32xf32>
    %594 = arith.addf %569, %560 : vector<2x32xf32>
    %595 = arith.mulf %585, %594 : vector<2x32xf32>
    %596 = arith.mulf %579, %587 : vector<2x32xf32>
    %597 = arith.addf %595, %596 : vector<2x32xf32>
    %598 = math.tanh %597 : vector<2x32xf32>
    %599 = arith.mulf %593, %598 : vector<2x32xf32>
    %600 = arith.index_cast %567 : i32 to index
    %c0_155 = arith.constant 0 : index
    %601 = vector.load %arg5[%600, %c0_155] : memref<32x32xf32, #tpu.memory_space<vmem>>, vector<2x32xf32>
    tpu.vector_store %arg5[%600, %c0_155], %599 {strides = array<i32>} : memref<32x32xf32, #tpu.memory_space<vmem>>, vector<2x32xf32>,
    %602 = arith.index_cast %567 : i32 to index
    %c0_156 = arith.constant 0 : index
    %603 = vector.load %arg6[%602, %c0_156] : memref<32x32xf32, #tpu.memory_space<vmem>>, vector<2x32xf32>
    tpu.vector_store %arg6[%602, %c0_156], %597 {strides = array<i32>} : memref<32x32xf32, #tpu.memory_space<vmem>>, vector<2x32xf32>,
    %c16_i32 = arith.constant 16 : i32
    %c0_157 = arith.constant 0 : index
    %c0_158 = arith.constant 0 : index
    %604 = vector.load %arg5[%c0_157, %c0_158] : memref<32x32xf32, #tpu.memory_space<vmem>>, vector<32x32xf32>
    %c0_159 = arith.constant 0 : index
    %c0_160 = arith.constant 0 : index
    %c0_161 = arith.constant 0 : index
    %605 = vector.load %arg4[%c0_159, %c0_160, %c0_161] : memref<1x32x32xf32, #tpu.memory_space<vmem>>, vector<1x32x32xf32>
    %606 = vector.shape_cast %605 : vector<1x32x32xf32> to vector<32x32xf32>
    %607 = vector.shape_cast %604 : vector<32x32xf32> to vector<1x32x32xf32>
    tpu.vector_store %arg4[%c0_159, %c0_160, %c0_161], %607 {strides = array<i32>} : memref<1x32x32xf32, #tpu.memory_space<vmem>>, vector<1x32x32xf32>,
    return
  }
  func.func @transform_0(%arg0: i32) -> (i32, i32, i32) {
    %c0_i32 = arith.constant 0 : i32
    %c0_i32_0 = arith.constant 0 : i32
    %c0_i32_1 = arith.constant 0 : i32
    return %arg0, %c0_i32, %c0_i32_0 : i32, i32, i32
  }
  func.func @transform_1(%arg0: i32) -> (i32, i32) {
    %c0_i32 = arith.constant 0 : i32
    %c0_i32_0 = arith.constant 0 : i32
    %c0_i32_1 = arith.constant 0 : i32
    return %c0_i32, %c0_i32_0 : i32, i32
  }
  func.func @transform_2(%arg0: i32) -> (i32, i32) {
    %c0_i32 = arith.constant 0 : i32
    %c0_i32_0 = arith.constant 0 : i32
    %c0_i32_1 = arith.constant 0 : i32
    return %c0_i32, %c0_i32_0 : i32, i32
  }
  func.func @transform_3(%arg0: i32) -> (i32, i32, i32) {
    %c0_i32 = arith.constant 0 : i32
    %c0_i32_0 = arith.constant 0 : i32
    %c0_i32_1 = arith.constant 0 : i32
    return %arg0, %c0_i32, %c0_i32_0 : i32, i32, i32
  }
}

</mosaic_0001>

<bundles_post_ra>
// kernel: tpu_custom_call.1
= control target key start
LH: loop header
LB: loop body
LE: loop exit
PB: predicated region body
PF: predicated region fallthrough
CT: control target
= control target key end

     0   :  { %8 = vsyncpa [#allocation6], 0  ;;  %s3559_s0 = inlined_call_operand.hbm [shape: f32[16,32,128], index: 0, kind: input, shape index: {}]   ;;  %s3560_s1 = inlined_call_operand.hbm [shape: f32[32,128], index: 1, kind: input, shape index: {}]   ;;  %s3561_s2 = inlined_call_operand.hbm [shape: f32[32,128], index: 2, kind: input, shape index: {}]   ;;  %s3562_s3 = inlined_call_operand.hbm [shape: f32[16,32,32], index: 3, kind: output, shape index: {}]  }
   0x1   :  { %10 = vsyncpa [#allocation6 + $0x1], 0 }
   0x2   :  { %11 = vsyncpa [#allocation9], 0 }
   0x3   :  { %12 = vsyncpa [#allocation7], 0 }
   0x4   :  { %14 = vsyncpa [#allocation7 + $0x1], 0  ;;  %s3020_s12 = smov 0   ;;  %s3022_s13 = smov 0  }
   0x5   :  { %s3024_s14 = smov 0   ;;  %s3026_s15 = smov 0  }
   0x6 LB: > { %s3041_s16 = sadd.s32 4294967295, %s2984_s15   ;;  %s2293_s17 = sadd.s32 4294967294, %s2984_s15   ;;  %s2984_s15 = sphi %s3026_s15, %s3583_s15   ;;  %s2980_s14 = sphi %s3024_s14, %s3582_s14   ;;  %s2976_s13 = sphi %s3022_s13, %s3581_s13   ;;  %s2972_s12 = sphi %s3020_s12, %s3580_s12  }
   0x7   : > { %p40_p0 = scmp.ne.s32.totalorder %s2976_s13, %s2972_s12  ;;  %p3563_p1 = scmp.eq.s32.totalorder %s3041_s16, 0 }
   0x8   : > { %p106_p2 = scmp.eq.s32.totalorder %s3041_s16, 15  ;;  %p112_p3 = scmp.eq.s32.totalorder %s2293_s17, 15 }
   0x9   : > { %p3050_p4 = por %p3563_p1, %p40_p0  ;;  %p2294_p5 = scmp.ge.s32.totalorder %s2984_s15, 1 }
   0xa   : > { %p3055_p6 = por %p112_p3, %p40_p0  ;;  %p119_p7 = scmp.lt.s32.totalorder %s2984_s15, 17 }
   0xb   : > { %s3567_s18 = scalar_select %p3050_p4, 1, 0 }
   0xc   : > { %s3568_s19 = scalar_select %p3055_p6, 1, 0 }
   0xd   : > { %p3061_p9 = pnand %p2294_p5, %p119_p7  ;;  %s2986_s21 = smov [#allocation8]  }
   0xe   : > { %s131_s22 = sshll.u32 %s2986_s21, 4  ;;  %s2987_s24 = smov [#allocation10]   ;;  %s132_s22 = int_to_ptr.vmem [resolvable:$true] %s131_s22 }
   0xf   : > { %s3569_s20 = scalar_select %p3061_p9, 1, 0 }
  0x10   : > { %p2639_p10 = pneg %p3061_p9  ;;  %s144_s25 = sshll.u32 %s2987_s24, 4  ;;  %s145_s25 = int_to_ptr.vmem [resolvable:$true] %s144_s25 }
  0x11   : > { %s2847_s26 = scalar_lea.vmem %s132_s22, 512  ;;  %p2855_p5 = scmp.lt.s32.totalorder %s132_s22, %s132_s22 }
  0x12   : > { %p3069_p11 = pnand %p2639_p10, %p3563_p1  ;;  %p2848_p13 = scmp.ne.s32.totalorder %s132_s22, %s2847_s26 }
  0x13   : > { %p2856_p7 = scmp.lt.s32.totalorder %s2847_s26, %s2847_s26 }
  0x14   : > { %p2838_p12 = pneg %p3069_p11 }
  0x15   : > { %p2857_p8 = por %p2856_p7, %p2855_p5 }
  0x16   : > { %p2850_p0 = pnand %p2848_p13, %p2838_p12 }
  0x18   : > { %p2851_p3 = pneg %p2850_p0 }
  0x1a   : > { %p2858_p10 = pnand %p2857_p8, %p2851_p3 }
  0x1c   : > { %2861 = shalt.err (!%p2858_p10)
}
  0x1d   : > { %s2988_s27 = smov 128   ;;  %s2989_s28 = smov 8  }
  0x1e   : > { %2642 = dma.hbm_to_vmem [thread:$0]  (!%p3069_p11), %s3560_s1, 512, %s132_s22, [#allocation9], %s2988_s27, %s2988_s27, %s2989_s28  }
  0x1f   : > { %s2873_s4 = scalar_lea.vmem %s145_s25, 512  ;;  %p2881_p8 = scmp.lt.s32.totalorder %s145_s25, %s145_s25 }
  0x20   : > { %p2874_p13 = scmp.ne.s32.totalorder %s145_s25, %s2873_s4  ;;  %p2882_p3 = scmp.lt.s32.totalorder %s2873_s4, %s2873_s4 }
  0x22   : > { %p2876_p0 = pnand %p2874_p13, %p2838_p12  ;;  %p2883_p7 = por %p2882_p3, %p2881_p8 }
  0x24   : > { %p2877_p5 = pneg %p2876_p0 }
  0x26   : > { %p2884_p10 = pnand %p2883_p7, %p2877_p5 }
  0x28   : > { %2887 = shalt.err (!%p2884_p10)
}
  0x29   : > { %2645 = dma.hbm_to_vmem [thread:$0]  (!%p3069_p11), %s3561_s2, 512, %s145_s25, [#allocation9], %s2988_s27, %s2988_s27, %s2989_s28  }
  0x2a   : > { %s3098_s7 = sadd.s32 1, %s2984_s15   ;;  %s27_s8 = sadd.s32 1, %s2980_s14 }
  0x2b   : > { %s24_s9 = ssub.s32 %s2984_s15, %s3098_s7  ;;  %p34_p12 = scmp.ne.s32.totalorder %s2980_s14, %s2976_s13 }
  0x2c   : > { %p25_p13 = scmp.eq.s32.totalorder %s24_s9, 0  ;;  %p35_p0 = scmp.eq.s32.totalorder %s2984_s15, 0 }
  0x2d   : > { %p3108_p5 = por %p106_p2, %p34_p12  ;;  %p2656_p8 = scmp.lt.s32.totalorder %s2984_s15, 16 }
  0x2e   : > { %s3114_s11 = scalar_select %p25_p13, %s2980_s14, %s27_s8  }
  0x2f   : > { %s3571_s10 = scalar_select %p3108_p5, 1, 0 }
  0x30   : > { %p36_p3 = por %p35_p0, %p34_p12  ;;  %s158_s17 = sand.u32 1, %s2980_s14  }
  0x31   : > { %s2298_s21 = sshll.u32 %s158_s17, 5  ;;  %s2347_s22 = sshll.u32 %s2984_s15, 9 }
  0x32   : > { %s3121_s25 = scalar_lea.hbm %s3559_s0, %s2347_s22  ;;  %s162_s26 = scalar_lea.vmem [#allocation5], %s2298_s21 }
  0x33   : > { %s169_s29 = sshll.u32 %s162_s26, 4  ;;  %p3125_p2 = pnand %p2656_p8, %p36_p3  ;;  %s3123_s29 = int_to_ptr.vmem [resolvable:$true] %s169_s29 }
  0x34   : > { %s3129_s4 = scalar_lea.sflag [#allocation6], %s158_s17  ;;  %s2888_s5 = scalar_lea.hbm %s3121_s25, 512 }
  0x35   : > { %p2889_p11 = scmp.ne.s32.totalorder %s3121_s25, %s2888_s5  ;;  %p2890_p7 = pneg %p3125_p2 }
  0x36   : > { %s2893_s9 = scalar_lea.hbm %s3559_s0, 8192  ;;  %p2894_p13 = scmp.lt.s32.totalorder %s3121_s25, %s3559_s0 }
  0x37   : > { %p2891_p10 = pnand %p2890_p7, %p2889_p11  ;;  %p2895_p0 = scmp.lt.s32.totalorder %s2893_s9, %s2888_s5 }
  0x39   : > { %p2892_p12 = pneg %p2891_p10  ;;  %p2896_p8 = por %p2895_p0, %p2894_p13 }
  0x3b   : > { %p2897_p3 = pnand %p2896_p8, %p2892_p12 }
  0x3d   : > { %2900 = shalt.err (!%p2897_p3)
}
  0x3e   : > { %s2901_s17 = scalar_lea.vmem %s3123_s29, 512  ;;  %s2990_s23 = smov [#allocation5]  }
  0x3f   : > { %p2902_p1 = scmp.ne.s32.totalorder %s3123_s29, %s2901_s17  ;;  %s2906_s24 = sshll.u32 %s2990_s23, 4  ;;  %s2907_s24 = int_to_ptr.vmem [resolvable:$false] %s2906_s24 }
  0x40   : > { %s2908_s26 = scalar_lea.vmem %s2907_s24, 1024  ;;  %p2909_p10 = scmp.lt.s32.totalorder %s3123_s29, %s2907_s24 }
  0x41   : > { %p2904_p6 = pnand %p2902_p1, %p2890_p7  ;;  %p2910_p5 = scmp.lt.s32.totalorder %s2908_s26, %s2901_s17 }
  0x43   : > { %p2905_p11 = pneg %p2904_p6  ;;  %p2911_p4 = por %p2910_p5, %p2909_p10 }
  0x45   : > { %p2912_p9 = pnand %p2911_p4, %p2905_p11 }
  0x47   : > { %2915 = shalt.err (!%p2912_p9)
}
  0x48   : > { %2649 = dma.hbm_to_vmem [thread:$0]  (!%p3125_p2), %s3121_s25, 512, %s3123_s29, %s3129_s4, %s2988_s27, %s2988_s27, %s2989_s28  }
  0x49   : > { %p3573_p1 = scmp.ne.s32.totalorder %s3569_s20, 0 }
  0x4a   : > { %s3156_s5 = sand.u32 (!%p3573_p1), 1, %s2976_s13   ;;  %p3574_p4 = scmp.ne.s32.totalorder (!%p3573_p1), %s3567_s18, 0 }
  0x4b   : > { %181 = sbr.rel (%p3573_p1) target bundleno = 11163 (0x2b9b), region = 32  ;;  %s2302_s6 = sshll.u32 (!%p3573_p1), %s3156_s5, 5 }
  0x4c   : > { %s184_s8 = scalar_lea.sflag (!%p3573_p1), [#allocation6], %s3156_s5  ;;  %s3160_s9 = scalar_lea.vmem (!%p3573_p1), [#allocation5], %s2302_s6 }
  0x50   : > { %2959 = dma.done.wait (%p3574_p4), %s184_s8, 512  }
  0x51   : > { %2961 = vsyncadd (%p3574_p4), %s184_s8, 4294966784  ;;  %p3575_p6 = scmp.eq.s32.totalorder %s3041_s16, 0 }
  0x53   : > { %2963 = dma.done.wait (%p3575_p6), [#allocation9], 1024   ;;  %p3576_p9 = pmov %p3575_p6 }
  0x54   : > { %s3170_s20 = scalar_lea.vmem [#allocation11], %s2302_s6  ;;  %p3577_p5 = scmp.ne.s32.totalorder %s3041_s16, 0 }
  0x55   : > { %2965 = vsyncadd (%p3576_p9), [#allocation9], 4294966272 }
  0x56   : > { %221 = sbr.rel (%p3577_p5) target bundleno = 96 (0x60), region = 48 }
  0x5b   : > { %vm222_vm0 = vcmask 261120   ;;  %v2991_v0 = vmov 0.0  }
  0x5c   : > { %223 = vst.msk [vmem:[#allocation2] sm:$0xff] %vm222_vm0, %v2991_v0  ;;  %224 = vst.msk [vmem:[#allocation2 + $0x8] sm:$0xff] %vm222_vm0, %v2991_v0 }
  0x5d   : > { %225 = vst.msk [vmem:[#allocation2 + $0x10] sm:$0xff] %vm222_vm0, %v2991_v0  ;;  %226 = vst.msk [vmem:[#allocation2 + $0x18] sm:$0xff] %vm222_vm0, %v2991_v0 }
  0x5e   : > { %227 = vst.msk [vmem:[#allocation3] sm:$0xff] %vm222_vm0, %v2991_v0  ;;  %228 = vst.msk [vmem:[#allocation3 + $0x8] sm:$0xff] %vm222_vm0, %v2991_v0 }
  0x5f   : > { %229 = vst.msk [vmem:[#allocation3 + $0x10] sm:$0xff] %vm222_vm0, %v2991_v0  ;;  %230 = vst.msk [vmem:[#allocation3 + $0x18] sm:$0xff] %vm222_vm0, %v2991_v0 }
  0x60 PF: > { %v242_v1 = vld [vmem:[#allocation8 + $0x18] sm:$0xff]  ;;  %v241_v2 = vld [vmem:[#allocation8 + $0x10] sm:$0xff]  ;;  %vm243_vm1 = vcmask 261120   ;;  %v2992_v4 = vmov 0.0   ;;  %v240_v5 = vld [vmem:[#allocation8 + $0x8] sm:$0xff]  ;;  %vm2993_vm2 = vmmov 0  }
  0x61   : > { %2437 = vmatprep.subr.mxu0 %v242_v1  ;;  %2451 = vmatprep.subr.mxu1 %v2992_v4  ;;  %v3176_v6 = vld [vmem:[#allocation10 + $0x18] sm:$0xff]  ;;  %v3178_v7 = vld [vmem:[#allocation10 + $0x10] sm:$0xff]  ;;  %v239_v8 = vld [vmem:[#allocation8] sm:$0xff]  ;;  %s2994_s18 = smov 64   ;;  %s2995_s27 = smov 32   ;;  %vm462_vm3 = vcmask 254976  }
  0x62   : > { %2438 = vmatpush3.msra.mxu0 %v242_v1  ;;  %2452 = vmatpush3.msra.mxu1 %v3176_v6  ;;  %v3182_v9 = vld [vmem:[#allocation10 + $0x8] sm:$0xff]  ;;  %v3186_v11 = vld [vmem:[#allocation10] sm:$0xff]  ;;  %s2996_s28 = smov 96   ;;  %v234_v42 = vld [vmem:[%s3160_s9 + $0x18] sm:$0xff]  ;;  %s2348_s25 = sshll.u32 %s3041_s16, 9 }
  0x63   : > { %v235_v3 = vld [vmem:[#allocation2] sm:$0xff]  ;;  %2439 = vmatprep.subr.mxu0 %v241_v2  ;;  %2453 = vmatprep.subr.mxu1 %v2992_v4  ;;  %v236_v10 = vld [vmem:[#allocation2 + $0x8] sm:$0xff]  ;;  %v233_v44 = vld [vmem:[%s3160_s9 + $0x10] sm:$0xff]  ;;  %s2201_s29 = sshll.u32 %s3170_s20, 4  ;;  %s3513_s21 = scalar_lea.hbm %s3562_s3, %s2348_s25  ;;  %s3515_s29 = int_to_ptr.vmem [resolvable:$true] %s2201_s29 }
  0x64   : > { %2445 = vmatprep.mubr.msk.f32.mxu0 %vm243_vm1, %v235_v3  ;;  %2440 = vmatpush3.msra.mxu0 %v241_v2  ;;  %v232_v12 = vld [vmem:[%s3160_s9 + $0x8] sm:$0xff]  ;;  %v231_v14 = vld [vmem:[%s3160_s9] sm:$0xff]  ;;  %v237_v34 = vld [vmem:[#allocation2 + $0x10] sm:$0xff]  ;;  %s2188_s22 = scalar_lea.sflag [#allocation7], %s3156_s5  ;;  %s2916_s17 = scalar_lea.vmem %s3515_s29, 512 }
  0x65   : > { %2441 = vmatprep.subr.mxu0 %v240_v5  ;;  %2454 = vmatpush3.msra.mxu1 %v3178_v7  ;;  %v353_v23 = vld [vmem:[#allocation3] sm:$0x3]  ;;  %v238_v35 = vld [vmem:[#allocation2 + $0x18] sm:$0xff]  ;;  %v469_v39 = vld [vmem:[#allocation3 + $0x2] sm:$0x3]  ;;  %p2917_p2 = scmp.ne.s32.totalorder %s3515_s29, %s2916_s17  ;;  %p3578_p7 = scmp.ne.s32.totalorder %s3571_s10, 0 }
  0x66   : > { %2442 = vmatpush3.msra.mxu0 %v240_v5  ;;  %2455 = vmatprep.subr.mxu1 %v2992_v4  ;;  %v583_v3 = vld [vmem:[#allocation3 + $0x4] sm:$0x3]  ;;  %s2997_s16 = smov [#allocation11]  }
  0x67   : > { %2443 = vmatprep.subr.mxu0 %v239_v8  ;;  %2456 = vmatpush3.msra.mxu1 %v3182_v9  ;;  %p2918_p12 = pnand %p2917_p2, %p3578_p7  ;;  %s2920_s23 = sshll.u32 %s2997_s16, 4  ;;  %s2921_s23 = int_to_ptr.vmem [resolvable:$false] %s2920_s23 }
  0x68   : > { %2444 = vmatpush3.msra.mxu0 %v239_v8  ;;  %2457 = vmatprep.subr.mxu1 %v2992_v4  ;;  %s2922_s24 = scalar_lea.vmem %s2921_s23, 1024  ;;  %p2923_p0 = scmp.lt.s32.totalorder %s3515_s29, %s2921_s23 }
  0x69   : > { %2446 = vmatmul.mubr.msk.f32.vlgmr.msra.gmra.mxu0 %vm243_vm1, %v236_v10  ;;  %2458 = vmatpush3.msra.mxu1 %v3186_v11  ;;  %p2919_p13 = pneg %p2918_p12  ;;  %p2924_p8 = scmp.lt.s32.totalorder %s2922_s24, %s2916_s17 }
  0x6a   : > { %2459 = vmatprep.mubr.msk.f32.mxu1 %vm2993_vm2, %v2992_v4  ;;  %2462 = vmatprep.subr.mxu0 %v2992_v4 }
  0x6b   : > { %2460 = vmatmul.mubr.f32.vlgmr.msra.gmra.mxu1 %v2992_v4  ;;  %2463 = vmatpush3.msra.mxu0 %v3176_v6  ;;  %p2925_p3 = por %p2924_p8, %p2923_p0 }
  0x6c   : > { %2464 = vmatprep.subr.mxu0 %v2992_v4  ;;  %2473 = vmatprep.subr.mxu1 %v2992_v4 }
  0x6d   : > { %2465 = vmatpush3.msra.mxu0 %v3178_v7  ;;  %2474 = vmatpush3.msra.mxu1 %v3176_v6  ;;  %p2926_p11 = pnand %p2925_p3, %p2919_p13 }
  0x6e   : > { %2466 = vmatprep.subr.mxu0 %v2992_v4  ;;  %2475 = vmatprep.subr.mxu1 %v2992_v4 }
  0x6f   : > { %2467 = vmatpush3.msra.mxu0 %v3182_v9  ;;  %2476 = vmatpush3.msra.mxu1 %v3178_v7 }
  0x70   : > { %2468 = vmatprep.subr.mxu0 %v2992_v4  ;;  %2477 = vmatprep.subr.mxu1 %v2992_v4 }
  0x71   : > { %2469 = vmatpush3.msra.mxu0 %v3186_v11  ;;  %2478 = vmatpush3.msra.mxu1 %v3182_v9 }
  0x72   : > { %2479 = vmatprep.subr.mxu1 %v2992_v4  ;;  %2481 = vmatprep.mubr.msk.f32.mxu1 %vm2993_vm2, %v2992_v4 }
  0x73   : > { %2480 = vmatpush3.msra.mxu1 %v3186_v11  ;;  %2484 = vmatprep.subr.mxu0 %v2992_v4 }
  0x74   : > { %2495 = vmatprep.subr.mxu1 %v2992_v4  ;;  %2448 = vmatprep.mubr.msk.f32.mxu0 %vm243_vm1, %v237_v34 }
  0x75   : > { %2449 = vmatmul.mubr.msk.f32.gmra.mxu0 %vm243_vm1, %v238_v35 }
  0x76   : > { %2470 = vmatprep.mubr.msk.f32.mxu0 %vm2993_vm2, %v2992_v4 }
 0x129   : > { %v2447_v13 = vpop.f32.mrf.mxu0 }
 0x12a   : > { %v342_v15 = vadd.f32 %v2447_v13, %v232_v12 }
 0x12b   : > { %v322_v16 = vpop.f32.mrf.mxu0  ;;  %v424_v17 = vpop.f32.mrf.mxu1 }
 0x12c   : > { %346 = vst [vmem:[#allocation4 + $0x8] sm:$0xff] %v342_v15  ;;  %v341_v18 = vadd.f32 %v322_v16, %v231_v14 }
 0x12d   : > { %v2461_v19 = vpop.f32.mrf.mxu1 }
 0x12e   : > { %345 = vst [vmem:[#allocation4] sm:$0xff] %v341_v18 }
 0x135   : > { %v354_v20 = vld [vmem:[#allocation4] sm:$0x3]  ;;  %v2450_v43 = vpop.f32.mrf.mxu0  ;;  %v470_v49 = vld [vmem:[#allocation4 + $0x2] sm:$0x3]  ;;  %v584_v12 = vld [vmem:[#allocation4 + $0x4] sm:$0x3] }
 0x136   : > { %v428_v21 = vadd.f32 %v424_v17, %v354_v20  ;;  %v344_v45 = vadd.f32 %v2450_v43, %v234_v42  ;;  %v698_v34 = vld [vmem:[#allocation4 + $0x6] sm:$0x3] }
 0x137   : > { %v332_v46 = vpop.f32.mrf.mxu0 }
 0x138   : > { %2704 = vtanh.f32 %v428_v21  ;;  %v2311_v24 = vmul.f32 -1.442695, %v428_v21  ;;  %348 = vst [vmem:[#allocation4 + $0x18] sm:$0xff] %v344_v45  ;;  %v343_v47 = vadd.f32 %v332_v46, %v233_v44 }
 0x13a   : > { %2706 = vpow2.f32 %v2311_v24  ;;  %347 = vst [vmem:[#allocation4 + $0x10] sm:$0xff] %v343_v47 }
 0x145   : > { %v2705_v22 = vpop.eup %2704 }
 0x146   : > { %443 = vrot.lane.b32.xlu0 %v2705_v22, %s2994_s18 }
 0x147   : > { %v2707_v25 = vpop.eup %2706 }
 0x148   : > { %v432_v26 = vadd.f32 1.0, %v2707_v25 }
 0x14a   : > { %438 = vrot.lane.b32.xlu0 %v353_v23, %s2995_s27  ;;  %2708 = vrcp.f32 %v432_v26 }
 0x157   : > { %v2709_v27 = vpop.eup %2708 }
 0x1b8   : > { %v444_v28 = vpop.permute.xlu0 %443 }
 0x1b9   : > { %v446_v29 = vmul.f32 %v2709_v27, %v444_v28 }
 0x1bb   : > { %448 = vrot.lane.b32.xlu1 %v446_v29, %s2995_s27 }
 0x1bc   : > { %v439_v30 = vpop.permute.xlu0 %438 }
 0x1bd   : > { %v441_v31 = vmul.f32 %v2709_v27, %v439_v30  ;;  %v697_v30 = vld [vmem:[#allocation3 + $0x6] sm:$0x3] }
 0x22d   : > { %v449_v32 = vpop.permute.xlu1 %448 }
 0x22e   : > { %v451_v33 = vadd.f32 %v449_v32, %v441_v31 }
 0x230   : > { %2710 = vtanh.f32 %v451_v33 }
 0x23d   : > { %v2711_v36 = vpop.eup %2710 }
 0x23e   : > { %454 = vrot.lane.b32.xlu1 %v2711_v36, %s2994_s18 }
 0x242   : > { %465 = vrot.lane.b32.xlu1 %v451_v33, %s2996_s28 }
 0x2b0   : > { %v455_v37 = vpop.permute.xlu1 %454 }
 0x2b1   : > { %v457_v38 = vmul.f32 %v2709_v27, %v455_v37 }
 0x2b3   : > { %459 = vrot.lane.b32.xlu0 %v457_v38, %s2995_s27 }
 0x2b4   : > { %v466_v40 = vpop.permute.xlu1 %465 }
 0x2b5   : > { %468 = vst.msk [vmem:[#allocation3] sm:$0x3] %vm462_vm3, %v466_v40  ;;  %v551_v41 = vadd.f32 %v469_v39, %v466_v40 }
 0x2b7   : > { %553 = vrot.lane.b32.xlu1 %v551_v41, %s2995_s27 }
 0x325   : > { %v460_v48 = vpop.permute.xlu0 %459 }
 0x326   : > { %463 = vst.msk [vmem:[#allocation2] sm:$0x3] %vm462_vm3, %v460_v48  ;;  %2471 = vmatmul.mubr.msk.f32.vlgmr.msra.gmra.mxu0 %vm243_vm1, %v460_v48 }
 0x327   : > { %2485 = vmatpush3.msra.mxu0 %v3176_v6  ;;  %2492 = vmatprep.mubr.msk.f32.mxu0 %vm2993_vm2, %v2992_v4 }
 0x328   : > { %2486 = vmatprep.subr.mxu0 %v2992_v4 }
 0x329   : > { %2487 = vmatpush3.msra.mxu0 %v3178_v7  ;;  %v554_v60 = vpop.permute.xlu1 %553 }
 0x32a   : > { %2488 = vmatprep.subr.mxu0 %v2992_v4 }
 0x32b   : > { %2489 = vmatpush3.msra.mxu0 %v3182_v9 }
 0x32c   : > { %2490 = vmatprep.subr.mxu0 %v2992_v4 }
 0x32d   : > { %2491 = vmatpush3.msra.mxu0 %v3186_v11 }
 0x32e   : > { %2506 = vmatprep.subr.mxu0 %v2992_v4 }
 0x3e6   : > { %v539_v50 = vpop.f32.mrf.mxu0 }
 0x3e7   : > { %v543_v51 = vadd.f32 %v539_v50, %v470_v49 }
 0x3e8   : > { %v2472_v52 = vpop.f32.mrf.mxu0 }
 0x3e9   : > { %2712 = vtanh.f32 %v543_v51  ;;  %v2313_v54 = vmul.f32 -1.442695, %v543_v51  ;;  %v811_v52 = vld [vmem:[#allocation3 + $0x8] sm:$0x3] }
 0x3eb   : > { %2714 = vpow2.f32 %v2313_v54 }
 0x3f6   : > { %v2713_v53 = vpop.eup %2712 }
 0x3f7   : > { %558 = vrot.lane.b32.xlu0 %v2713_v53, %s2994_s18 }
 0x3f8   : > { %v2715_v55 = vpop.eup %2714 }
 0x3f9   : > { %v547_v56 = vadd.f32 1.0, %v2715_v55 }
 0x3fb   : > { %2716 = vrcp.f32 %v547_v56 }
 0x408   : > { %v2717_v57 = vpop.eup %2716 }
 0x409   : > { %v556_v61 = vmul.f32 %v2717_v57, %v554_v60 }
 0x469   : > { %v559_v58 = vpop.permute.xlu0 %558 }
 0x46a   : > { %v561_v59 = vmul.f32 %v2717_v57, %v559_v58 }
 0x46c   : > { %563 = vrot.lane.b32.xlu0 %v561_v59, %s2995_s27 }
 0x4de   : > { %v564_v62 = vpop.permute.xlu0 %563 }
 0x4df   : > { %v566_v63 = vadd.f32 %v564_v62, %v556_v61 }
 0x4e1   : > { %2718 = vtanh.f32 %v566_v63 }
 0x4ee   : > { %v2719_v0 = vpop.eup %2718 }
 0x4ef   : > { %569 = vrot.lane.b32.xlu1 %v2719_v0, %s2994_s18 }
 0x4f3   : > { %579 = vrot.lane.b32.xlu1 %v566_v63, %s2996_s28 }
 0x561   : > { %v570_v1 = vpop.permute.xlu1 %569 }
 0x562   : > { %v572_v2 = vmul.f32 %v2717_v57, %v570_v1  ;;  %v812_v57 = vld [vmem:[#allocation4 + $0x8] sm:$0x3] }
 0x564   : > { %574 = vrot.lane.b32.xlu0 %v572_v2, %s2995_s27 }
 0x565   : > { %v580_v5 = vpop.permute.xlu1 %579 }
 0x566   : > { %582 = vst.msk [vmem:[#allocation3 + $0x2] sm:$0x3] %vm462_vm3, %v580_v5  ;;  %v665_v8 = vadd.f32 %v583_v3, %v580_v5 }
 0x568   : > { %667 = vrot.lane.b32.xlu1 %v665_v8, %s2995_s27 }
 0x5d6   : > { %v575_v10 = vpop.permute.xlu0 %574 }
 0x5d7   : > { %577 = vst.msk [vmem:[#allocation2 + $0x2] sm:$0x3] %vm462_vm3, %v575_v10  ;;  %2482 = vmatmul.mubr.msk.f32.vlgmr.msra.gmra.mxu1 %vm243_vm1, %v575_v10 }
 0x5d8   : > { %2496 = vmatpush3.msra.mxu1 %v3176_v6  ;;  %2503 = vmatprep.mubr.msk.f32.mxu1 %vm2993_vm2, %v2992_v4 }
 0x5d9   : > { %2497 = vmatprep.subr.mxu1 %v2992_v4 }
 0x5da   : > { %2498 = vmatpush3.msra.mxu1 %v3178_v7  ;;  %v668_v23 = vpop.permute.xlu1 %667 }
 0x5db   : > { %2499 = vmatprep.subr.mxu1 %v2992_v4 }
 0x5dc   : > { %2500 = vmatpush3.msra.mxu1 %v3182_v9 }
 0x5dd   : > { %2501 = vmatprep.subr.mxu1 %v2992_v4 }
 0x5de   : > { %2502 = vmatpush3.msra.mxu1 %v3186_v11 }
 0x5df   : > { %2517 = vmatprep.subr.mxu1 %v2992_v4 }
 0x697   : > { %v653_v13 = vpop.f32.mrf.mxu1 }
 0x698   : > { %v657_v14 = vadd.f32 %v653_v13, %v584_v12 }
 0x699   : > { %v2483_v15 = vpop.f32.mrf.mxu1 }
 0x69a   : > { %2720 = vtanh.f32 %v657_v14  ;;  %v2315_v17 = vmul.f32 -1.442695, %v657_v14 }
 0x69c   : > { %2722 = vpow2.f32 %v2315_v17 }
 0x6a7   : > { %v2721_v16 = vpop.eup %2720 }
 0x6a8   : > { %672 = vrot.lane.b32.xlu0 %v2721_v16, %s2994_s18  ;;  %v925_v16 = vld [vmem:[#allocation3 + $0xa] sm:$0x3] }
 0x6a9   : > { %v2723_v18 = vpop.eup %2722 }
 0x6aa   : > { %v661_v19 = vadd.f32 1.0, %v2723_v18 }
 0x6ac   : > { %2724 = vrcp.f32 %v661_v19 }
 0x6b9   : > { %v2725_v20 = vpop.eup %2724 }
 0x6ba   : > { %v670_v24 = vmul.f32 %v2725_v20, %v668_v23 }
 0x71a   : > { %v673_v21 = vpop.permute.xlu0 %672 }
 0x71b   : > { %v675_v22 = vmul.f32 %v2725_v20, %v673_v21 }
 0x71d   : > { %677 = vrot.lane.b32.xlu0 %v675_v22, %s2995_s27 }
 0x78f   : > { %v678_v25 = vpop.permute.xlu0 %677 }
 0x790   : > { %v680_v26 = vadd.f32 %v678_v25, %v670_v24 }
 0x792   : > { %2726 = vtanh.f32 %v680_v26 }
 0x79f   : > { %v2727_v27 = vpop.eup %2726 }
 0x7a0   : > { %683 = vrot.lane.b32.xlu1 %v2727_v27, %s2994_s18 }
 0x7a4   : > { %693 = vrot.lane.b32.xlu1 %v680_v26, %s2996_s28 }
 0x812   : > { %v684_v28 = vpop.permute.xlu1 %683 }
 0x813   : > { %v686_v29 = vmul.f32 %v2725_v20, %v684_v28  ;;  %v926_v20 = vld [vmem:[#allocation4 + $0xa] sm:$0x3] }
 0x815   : > { %688 = vrot.lane.b32.xlu0 %v686_v29, %s2995_s27 }
 0x816   : > { %v694_v31 = vpop.permute.xlu1 %693 }
 0x817   : > { %696 = vst.msk [vmem:[#allocation3 + $0x4] sm:$0x3] %vm462_vm3, %v694_v31  ;;  %v779_v32 = vadd.f32 %v697_v30, %v694_v31 }
 0x819   : > { %781 = vrot.lane.b32.xlu1 %v779_v32, %s2995_s27 }
 0x887   : > { %v689_v33 = vpop.permute.xlu0 %688 }
 0x888   : > { %691 = vst.msk [vmem:[#allocation2 + $0x4] sm:$0x3] %vm462_vm3, %v689_v33  ;;  %2493 = vmatmul.mubr.msk.f32.vlgmr.msra.gmra.mxu0 %vm243_vm1, %v689_v33 }
 0x889   : > { %2507 = vmatpush3.msra.mxu0 %v3176_v6  ;;  %2514 = vmatprep.mubr.msk.f32.mxu0 %vm2993_vm2, %v2992_v4 }
 0x88a   : > { %2508 = vmatprep.subr.mxu0 %v2992_v4 }
 0x88b   : > { %2509 = vmatpush3.msra.mxu0 %v3178_v7  ;;  %v782_v45 = vpop.permute.xlu1 %781 }
 0x88c   : > { %2510 = vmatprep.subr.mxu0 %v2992_v4 }
 0x88d   : > { %2511 = vmatpush3.msra.mxu0 %v3182_v9 }
 0x88e   : > { %2512 = vmatprep.subr.mxu0 %v2992_v4 }
 0x88f   : > { %2513 = vmatpush3.msra.mxu0 %v3186_v11 }
 0x890   : > { %2528 = vmatprep.subr.mxu0 %v2992_v4 }
 0x948   : > { %v767_v35 = vpop.f32.mrf.mxu0 }
 0x949   : > { %v771_v36 = vadd.f32 %v767_v35, %v698_v34 }
 0x94a   : > { %v2494_v37 = vpop.f32.mrf.mxu0 }
 0x94b   : > { %2728 = vtanh.f32 %v771_v36  ;;  %v2317_v39 = vmul.f32 -1.442695, %v771_v36 }
 0x94d   : > { %2730 = vpow2.f32 %v2317_v39 }
 0x958   : > { %v2729_v38 = vpop.eup %2728 }
 0x959   : > { %786 = vrot.lane.b32.xlu0 %v2729_v38, %s2994_s18  ;;  %v1039_v38 = vld [vmem:[#allocation3 + $0xc] sm:$0x3] }
 0x95a   : > { %v2731_v40 = vpop.eup %2730 }
 0x95b   : > { %v775_v41 = vadd.f32 1.0, %v2731_v40 }
 0x95d   : > { %2732 = vrcp.f32 %v775_v41 }
 0x96a   : > { %v2733_v42 = vpop.eup %2732 }
 0x96b   : > { %v784_v46 = vmul.f32 %v2733_v42, %v782_v45 }
 0x9cb   : > { %v787_v43 = vpop.permute.xlu0 %786 }
 0x9cc   : > { %v789_v44 = vmul.f32 %v2733_v42, %v787_v43 }
 0x9ce   : > { %791 = vrot.lane.b32.xlu0 %v789_v44, %s2995_s27 }
 0xa40   : > { %v792_v47 = vpop.permute.xlu0 %791 }
 0xa41   : > { %v794_v48 = vadd.f32 %v792_v47, %v784_v46 }
 0xa43   : > { %2734 = vtanh.f32 %v794_v48 }
 0xa50   : > { %v2735_v49 = vpop.eup %2734 }
 0xa51   : > { %797 = vrot.lane.b32.xlu1 %v2735_v49, %s2994_s18 }
 0xa55   : > { %807 = vrot.lane.b32.xlu1 %v794_v48, %s2996_s28 }
 0xac3   : > { %v798_v50 = vpop.permute.xlu1 %797 }
 0xac4   : > { %v800_v51 = vmul.f32 %v2733_v42, %v798_v50  ;;  %v1040_v42 = vld [vmem:[#allocation4 + $0xc] sm:$0x3] }
 0xac6   : > { %802 = vrot.lane.b32.xlu0 %v800_v51, %s2995_s27 }
 0xac7   : > { %v808_v53 = vpop.permute.xlu1 %807 }
 0xac8   : > { %810 = vst.msk [vmem:[#allocation3 + $0x6] sm:$0x3] %vm462_vm3, %v808_v53  ;;  %v893_v54 = vadd.f32 %v811_v52, %v808_v53 }
 0xaca   : > { %895 = vrot.lane.b32.xlu1 %v893_v54, %s2995_s27 }
 0xb38   : > { %v803_v55 = vpop.permute.xlu0 %802 }
 0xb39   : > { %805 = vst.msk [vmem:[#allocation2 + $0x6] sm:$0x3] %vm462_vm3, %v803_v55  ;;  %2504 = vmatmul.mubr.msk.f32.vlgmr.msra.gmra.mxu1 %vm243_vm1, %v803_v55 }
 0xb3a   : > { %2518 = vmatpush3.msra.mxu1 %v3176_v6  ;;  %2525 = vmatprep.mubr.msk.f32.mxu1 %vm2993_vm2, %v2992_v4 }
 0xb3b   : > { %2519 = vmatprep.subr.mxu1 %v2992_v4 }
 0xb3c   : > { %2520 = vmatpush3.msra.mxu1 %v3178_v7  ;;  %v896_v5 = vpop.permute.xlu1 %895 }
 0xb3d   : > { %2521 = vmatprep.subr.mxu1 %v2992_v4 }
 0xb3e   : > { %2522 = vmatpush3.msra.mxu1 %v3182_v9 }
 0xb3f   : > { %2523 = vmatprep.subr.mxu1 %v2992_v4 }
 0xb40   : > { %2524 = vmatpush3.msra.mxu1 %v3186_v11  ;;  %v2179_v56 = vld [vmem:[#allocation2] sm:$0xff] }
 0xb41   : > { %2539 = vmatprep.subr.mxu1 %v2992_v4  ;;  %2183 = vst.msk [vmem:[%s3170_s20] sm:$0xff] %vm243_vm1, %v2179_v56 }
 0xbf9   : > { %v881_v58 = vpop.f32.mrf.mxu1 }
 0xbfa   : > { %v885_v59 = vadd.f32 %v881_v58, %v812_v57 }
 0xbfb   : > { %v2505_v60 = vpop.f32.mrf.mxu1 }
 0xbfc   : > { %2736 = vtanh.f32 %v885_v59  ;;  %v2319_v62 = vmul.f32 -1.442695, %v885_v59  ;;  %v1153_v60 = vld [vmem:[#allocation3 + $0xe] sm:$0x3] }
 0xbfe   : > { %2738 = vpow2.f32 %v2319_v62 }
 0xc09   : > { %v2737_v61 = vpop.eup %2736 }
 0xc0a   : > { %900 = vrot.lane.b32.xlu0 %v2737_v61, %s2994_s18 }
 0xc0b   : > { %v2739_v63 = vpop.eup %2738 }
 0xc0c   : > { %v889_v0 = vadd.f32 1.0, %v2739_v63 }
 0xc0e   : > { %2740 = vrcp.f32 %v889_v0  ;;  %v1154_v0 = vld [vmem:[#allocation4 + $0xe] sm:$0x3] }
 0xc1b   : > { %v2741_v1 = vpop.eup %2740 }
 0xc1c   : > { %v898_v8 = vmul.f32 %v2741_v1, %v896_v5 }
 0xc7c   : > { %v901_v2 = vpop.permute.xlu0 %900 }
 0xc7d   : > { %v903_v3 = vmul.f32 %v2741_v1, %v901_v2 }
 0xc7f   : > { %905 = vrot.lane.b32.xlu0 %v903_v3, %s2995_s27 }
 0xcf1   : > { %v906_v10 = vpop.permute.xlu0 %905 }
 0xcf2   : > { %v908_v12 = vadd.f32 %v906_v10, %v898_v8 }
 0xcf4   : > { %2742 = vtanh.f32 %v908_v12 }
 0xd01   : > { %v2743_v13 = vpop.eup %2742 }
 0xd02   : > { %911 = vrot.lane.b32.xlu1 %v2743_v13, %s2994_s18 }
 0xd06   : > { %921 = vrot.lane.b32.xlu1 %v908_v12, %s2996_s28 }
 0xd74   : > { %v912_v14 = vpop.permute.xlu1 %911 }
 0xd75   : > { %v914_v15 = vmul.f32 %v2741_v1, %v912_v14 }
 0xd77   : > { %916 = vrot.lane.b32.xlu0 %v914_v15, %s2995_s27 }
 0xd78   : > { %v922_v17 = vpop.permute.xlu1 %921 }
 0xd79   : > { %924 = vst.msk [vmem:[#allocation3 + $0x8] sm:$0x3] %vm462_vm3, %v922_v17  ;;  %v1007_v18 = vadd.f32 %v925_v16, %v922_v17 }
 0xd7b   : > { %1009 = vrot.lane.b32.xlu1 %v1007_v18, %s2995_s27 }
 0xde9   : > { %v917_v19 = vpop.permute.xlu0 %916 }
 0xdea   : > { %919 = vst.msk [vmem:[#allocation2 + $0x8] sm:$0x3] %vm462_vm3, %v917_v19  ;;  %2515 = vmatmul.mubr.msk.f32.vlgmr.msra.gmra.mxu0 %vm243_vm1, %v917_v19 }
 0xdeb   : > { %2529 = vmatpush3.msra.mxu0 %v3176_v6  ;;  %2536 = vmatprep.mubr.msk.f32.mxu0 %vm2993_vm2, %v2992_v4 }
 0xdec   : > { %2530 = vmatprep.subr.mxu0 %v2992_v4 }
 0xded   : > { %2531 = vmatpush3.msra.mxu0 %v3178_v7  ;;  %v1010_v31 = vpop.permute.xlu1 %1009 }
 0xdee   : > { %2532 = vmatprep.subr.mxu0 %v2992_v4 }
 0xdef   : > { %2533 = vmatpush3.msra.mxu0 %v3182_v9 }
 0xdf0   : > { %2534 = vmatprep.subr.mxu0 %v2992_v4 }
 0xdf1   : > { %2535 = vmatpush3.msra.mxu0 %v3186_v11 }
 0xdf2   : > { %2550 = vmatprep.subr.mxu0 %v2992_v4 }
 0xeaa   : > { %v995_v21 = vpop.f32.mrf.mxu0 }
 0xeab   : > { %v999_v22 = vadd.f32 %v995_v21, %v926_v20 }
 0xeac   : > { %v2516_v23 = vpop.f32.mrf.mxu0 }
 0xead   : > { %2744 = vtanh.f32 %v999_v22  ;;  %v2321_v25 = vmul.f32 -1.442695, %v999_v22  ;;  %v1267_v23 = vld [vmem:[#allocation3 + $0x10] sm:$0x3] }
 0xeaf   : > { %2746 = vpow2.f32 %v2321_v25 }
 0xeba   : > { %v2745_v24 = vpop.eup %2744 }
 0xebb   : > { %1014 = vrot.lane.b32.xlu0 %v2745_v24, %s2994_s18 }
 0xebc   : > { %v2747_v26 = vpop.eup %2746 }
 0xebd   : > { %v1003_v27 = vadd.f32 1.0, %v2747_v26 }
 0xebf   : > { %2748 = vrcp.f32 %v1003_v27 }
 0xecc   : > { %v2749_v28 = vpop.eup %2748 }
 0xecd   : > { %v1012_v32 = vmul.f32 %v2749_v28, %v1010_v31 }
 0xf2d   : > { %v1015_v29 = vpop.permute.xlu0 %1014 }
 0xf2e   : > { %v1017_v30 = vmul.f32 %v2749_v28, %v1015_v29 }
 0xf30   : > { %1019 = vrot.lane.b32.xlu0 %v1017_v30, %s2995_s27 }
 0xfa2   : > { %v1020_v33 = vpop.permute.xlu0 %1019 }
 0xfa3   : > { %v1022_v34 = vadd.f32 %v1020_v33, %v1012_v32 }
 0xfa5   : > { %2750 = vtanh.f32 %v1022_v34 }
 0xfb2   : > { %v2751_v35 = vpop.eup %2750 }
 0xfb3   : > { %1025 = vrot.lane.b32.xlu1 %v2751_v35, %s2994_s18 }
 0xfb7   : > { %1035 = vrot.lane.b32.xlu1 %v1022_v34, %s2996_s28 }
0x1025   : > { %v1026_v36 = vpop.permute.xlu1 %1025 }
0x1026   : > { %v1028_v37 = vmul.f32 %v2749_v28, %v1026_v36  ;;  %v1268_v28 = vld [vmem:[#allocation4 + $0x10] sm:$0x3] }
0x1028   : > { %1030 = vrot.lane.b32.xlu0 %v1028_v37, %s2995_s27 }
0x1029   : > { %v1036_v39 = vpop.permute.xlu1 %1035 }
0x102a   : > { %1038 = vst.msk [vmem:[#allocation3 + $0xa] sm:$0x3] %vm462_vm3, %v1036_v39  ;;  %v1121_v40 = vadd.f32 %v1039_v38, %v1036_v39 }
0x102c   : > { %1123 = vrot.lane.b32.xlu1 %v1121_v40, %s2995_s27 }
0x109a   : > { %v1031_v41 = vpop.permute.xlu0 %1030 }
0x109b   : > { %1033 = vst.msk [vmem:[#allocation2 + $0xa] sm:$0x3] %vm462_vm3, %v1031_v41  ;;  %2526 = vmatmul.mubr.msk.f32.vlgmr.msra.gmra.mxu1 %vm243_vm1, %v1031_v41 }
0x109c   : > { %2540 = vmatpush3.msra.mxu1 %v3176_v6  ;;  %2547 = vmatprep.mubr.msk.f32.mxu1 %vm2993_vm2, %v2992_v4 }
0x109d   : > { %2541 = vmatprep.subr.mxu1 %v2992_v4 }
0x109e   : > { %2542 = vmatpush3.msra.mxu1 %v3178_v7  ;;  %v1124_v53 = vpop.permute.xlu1 %1123 }
0x109f   : > { %2543 = vmatprep.subr.mxu1 %v2992_v4 }
0x10a0   : > { %2544 = vmatpush3.msra.mxu1 %v3182_v9 }
0x10a1   : > { %2545 = vmatprep.subr.mxu1 %v2992_v4 }
0x10a2   : > { %2546 = vmatpush3.msra.mxu1 %v3186_v11 }
0x10a3   : > { %2561 = vmatprep.subr.mxu1 %v2992_v4 }
0x115b   : > { %v1109_v43 = vpop.f32.mrf.mxu1 }
0x115c   : > { %v1113_v44 = vadd.f32 %v1109_v43, %v1040_v42 }
0x115d   : > { %v2527_v45 = vpop.f32.mrf.mxu1 }
0x115e   : > { %2752 = vtanh.f32 %v1113_v44  ;;  %v2323_v47 = vmul.f32 -1.442695, %v1113_v44 }
0x1160   : > { %2754 = vpow2.f32 %v2323_v47 }
0x116b   : > { %v2753_v46 = vpop.eup %2752 }
0x116c   : > { %1128 = vrot.lane.b32.xlu0 %v2753_v46, %s2994_s18  ;;  %v1381_v46 = vld [vmem:[#allocation3 + $0x12] sm:$0x3] }
0x116d   : > { %v2755_v48 = vpop.eup %2754 }
0x116e   : > { %v1117_v49 = vadd.f32 1.0, %v2755_v48 }
0x1170   : > { %2756 = vrcp.f32 %v1117_v49 }
0x117d   : > { %v2757_v50 = vpop.eup %2756 }
0x117e   : > { %v1126_v54 = vmul.f32 %v2757_v50, %v1124_v53 }
0x11de   : > { %v1129_v51 = vpop.permute.xlu0 %1128 }
0x11df   : > { %v1131_v52 = vmul.f32 %v2757_v50, %v1129_v51 }
0x11e1   : > { %1133 = vrot.lane.b32.xlu0 %v1131_v52, %s2995_s27 }
0x1253   : > { %v1134_v55 = vpop.permute.xlu0 %1133 }
0x1254   : > { %v1136_v56 = vadd.f32 %v1134_v55, %v1126_v54 }
0x1256   : > { %2758 = vtanh.f32 %v1136_v56 }
0x1263   : > { %v2759_v57 = vpop.eup %2758 }
0x1264   : > { %1139 = vrot.lane.b32.xlu1 %v2759_v57, %s2994_s18 }
0x1268   : > { %1149 = vrot.lane.b32.xlu1 %v1136_v56, %s2996_s28 }
0x12d6   : > { %v1140_v58 = vpop.permute.xlu1 %1139 }
0x12d7   : > { %v1142_v59 = vmul.f32 %v2757_v50, %v1140_v58  ;;  %v1382_v50 = vld [vmem:[#allocation4 + $0x12] sm:$0x3] }
0x12d9   : > { %1144 = vrot.lane.b32.xlu0 %v1142_v59, %s2995_s27 }
0x12da   : > { %v1150_v61 = vpop.permute.xlu1 %1149 }
0x12db   : > { %1152 = vst.msk [vmem:[#allocation3 + $0xc] sm:$0x3] %vm462_vm3, %v1150_v61  ;;  %v1235_v62 = vadd.f32 %v1153_v60, %v1150_v61 }
0x12dd   : > { %1237 = vrot.lane.b32.xlu1 %v1235_v62, %s2995_s27 }
0x134b   : > { %v1145_v63 = vpop.permute.xlu0 %1144 }
0x134c   : > { %1147 = vst.msk [vmem:[#allocation2 + $0xc] sm:$0x3] %vm462_vm3, %v1145_v63  ;;  %2537 = vmatmul.mubr.msk.f32.vlgmr.msra.gmra.mxu0 %vm243_vm1, %v1145_v63 }
0x134d   : > { %2551 = vmatpush3.msra.mxu0 %v3176_v6  ;;  %2558 = vmatprep.mubr.msk.f32.mxu0 %vm2993_vm2, %v2992_v4 }
0x134e   : > { %2552 = vmatprep.subr.mxu0 %v2992_v4 }
0x134f   : > { %2553 = vmatpush3.msra.mxu0 %v3178_v7  ;;  %v1238_v16 = vpop.permute.xlu1 %1237 }
0x1350   : > { %2554 = vmatprep.subr.mxu0 %v2992_v4 }
0x1351   : > { %2555 = vmatpush3.msra.mxu0 %v3182_v9 }
0x1352   : > { %2556 = vmatprep.subr.mxu0 %v2992_v4 }
0x1353   : > { %2557 = vmatpush3.msra.mxu0 %v3186_v11 }
0x1354   : > { %2572 = vmatprep.subr.mxu0 %v2992_v4 }
0x140c   : > { %v1223_v1 = vpop.f32.mrf.mxu0 }
0x140d   : > { %v1227_v2 = vadd.f32 %v1223_v1, %v1154_v0 }
0x140e   : > { %v2538_v3 = vpop.f32.mrf.mxu0 }
0x140f   : > { %2760 = vtanh.f32 %v1227_v2  ;;  %v2325_v8 = vmul.f32 -1.442695, %v1227_v2 }
0x1411   : > { %2762 = vpow2.f32 %v2325_v8 }
0x141c   : > { %v2761_v5 = vpop.eup %2760 }
0x141d   : > { %1242 = vrot.lane.b32.xlu0 %v2761_v5, %s2994_s18  ;;  %v1495_v5 = vld [vmem:[#allocation3 + $0x14] sm:$0x3] }
0x141e   : > { %v2763_v10 = vpop.eup %2762 }
0x141f   : > { %v1231_v12 = vadd.f32 1.0, %v2763_v10 }
0x1421   : > { %2764 = vrcp.f32 %v1231_v12 }
0x142e   : > { %v2765_v13 = vpop.eup %2764 }
0x142f   : > { %v1240_v17 = vmul.f32 %v2765_v13, %v1238_v16 }
0x148f   : > { %v1243_v14 = vpop.permute.xlu0 %1242 }
0x1490   : > { %v1245_v15 = vmul.f32 %v2765_v13, %v1243_v14 }
0x1492   : > { %1247 = vrot.lane.b32.xlu0 %v1245_v15, %s2995_s27 }
0x1504   : > { %v1248_v18 = vpop.permute.xlu0 %1247 }
0x1505   : > { %v1250_v19 = vadd.f32 %v1248_v18, %v1240_v17 }
0x1507   : > { %2766 = vtanh.f32 %v1250_v19 }
0x1514   : > { %v2767_v20 = vpop.eup %2766 }
0x1515   : > { %1253 = vrot.lane.b32.xlu1 %v2767_v20, %s2994_s18 }
0x1519   : > { %1263 = vrot.lane.b32.xlu1 %v1250_v19, %s2996_s28 }
0x1587   : > { %v1254_v21 = vpop.permute.xlu1 %1253 }
0x1588   : > { %v1256_v22 = vmul.f32 %v2765_v13, %v1254_v21  ;;  %v1496_v13 = vld [vmem:[#allocation4 + $0x14] sm:$0x3] }
0x158a   : > { %1258 = vrot.lane.b32.xlu0 %v1256_v22, %s2995_s27 }
0x158b   : > { %v1264_v24 = vpop.permute.xlu1 %1263 }
0x158c   : > { %1266 = vst.msk [vmem:[#allocation3 + $0xe] sm:$0x3] %vm462_vm3, %v1264_v24  ;;  %v1349_v25 = vadd.f32 %v1267_v23, %v1264_v24 }
0x158e   : > { %1351 = vrot.lane.b32.xlu1 %v1349_v25, %s2995_s27 }
0x15fc   : > { %v1259_v26 = vpop.permute.xlu0 %1258 }
0x15fd   : > { %1261 = vst.msk [vmem:[#allocation2 + $0xe] sm:$0x3] %vm462_vm3, %v1259_v26  ;;  %2548 = vmatmul.mubr.msk.f32.vlgmr.msra.gmra.mxu1 %vm243_vm1, %v1259_v26 }
0x15fe   : > { %2562 = vmatpush3.msra.mxu1 %v3176_v6  ;;  %2569 = vmatprep.mubr.msk.f32.mxu1 %vm2993_vm2, %v2992_v4 }
0x15ff   : > { %2563 = vmatprep.subr.mxu1 %v2992_v4 }
0x1600   : > { %2564 = vmatpush3.msra.mxu1 %v3178_v7  ;;  %v1352_v39 = vpop.permute.xlu1 %1351 }
0x1601   : > { %2565 = vmatprep.subr.mxu1 %v2992_v4 }
0x1602   : > { %2566 = vmatpush3.msra.mxu1 %v3182_v9 }
0x1603   : > { %2567 = vmatprep.subr.mxu1 %v2992_v4 }
0x1604   : > { %2568 = vmatpush3.msra.mxu1 %v3186_v11  ;;  %v2180_v27 = vld [vmem:[#allocation2 + $0x8] sm:$0xff] }
0x1605   : > { %2583 = vmatprep.subr.mxu1 %v2992_v4  ;;  %2184 = vst.msk [vmem:[%s3170_s20 + $0x8] sm:$0xff] %vm243_vm1, %v2180_v27  ;;  %v1609_v27 = vld [vmem:[#allocation3 + $0x16] sm:$0x3] }
0x16bd   : > { %v1337_v29 = vpop.f32.mrf.mxu1 }
0x16be   : > { %v1341_v30 = vadd.f32 %v1337_v29, %v1268_v28 }
0x16bf   : > { %v2549_v31 = vpop.f32.mrf.mxu1 }
0x16c0   : > { %2768 = vtanh.f32 %v1341_v30  ;;  %v2327_v33 = vmul.f32 -1.442695, %v1341_v30  ;;  %v3427_v31 = vld [vmem:[#allocation10 + $0x18] sm:$0xff] }
0x16c2   : > { %2770 = vpow2.f32 %v2327_v33  ;;  %v3437_v33 = vld [vmem:[#allocation10 + $0x8] sm:$0xff] }
0x16cd   : > { %v2769_v32 = vpop.eup %2768 }
0x16ce   : > { %1356 = vrot.lane.b32.xlu0 %v2769_v32, %s2994_s18  ;;  %v3433_v32 = vld [vmem:[#allocation10 + $0x10] sm:$0xff] }
0x16cf   : > { %v2771_v34 = vpop.eup %2770 }
0x16d0   : > { %v1345_v35 = vadd.f32 1.0, %v2771_v34  ;;  %v3441_v34 = vld [vmem:[#allocation10] sm:$0xff] }
0x16d2   : > { %2772 = vrcp.f32 %v1345_v35  ;;  %v1610_v35 = vld [vmem:[#allocation4 + $0x16] sm:$0x3] }
0x16df   : > { %v2773_v36 = vpop.eup %2772 }
0x16e0   : > { %v1354_v40 = vmul.f32 %v2773_v36, %v1352_v39 }
0x1740   : > { %v1357_v37 = vpop.permute.xlu0 %1356 }
0x1741   : > { %v1359_v38 = vmul.f32 %v2773_v36, %v1357_v37 }
0x1743   : > { %1361 = vrot.lane.b32.xlu0 %v1359_v38, %s2995_s27 }
0x17b5   : > { %v1362_v41 = vpop.permute.xlu0 %1361 }
0x17b6   : > { %v1364_v42 = vadd.f32 %v1362_v41, %v1354_v40 }
0x17b8   : > { %2774 = vtanh.f32 %v1364_v42 }
0x17c5   : > { %v2775_v43 = vpop.eup %2774 }
0x17c6   : > { %1367 = vrot.lane.b32.xlu1 %v2775_v43, %s2994_s18 }
0x17ca   : > { %1377 = vrot.lane.b32.xlu1 %v1364_v42, %s2996_s28 }
0x1838   : > { %v1368_v44 = vpop.permute.xlu1 %1367 }
0x1839   : > { %v1370_v45 = vmul.f32 %v2773_v36, %v1368_v44 }
0x183b   : > { %1372 = vrot.lane.b32.xlu0 %v1370_v45, %s2995_s27 }
0x183c   : > { %v1378_v47 = vpop.permute.xlu1 %1377 }
0x183d   : > { %1380 = vst.msk [vmem:[#allocation3 + $0x10] sm:$0x3] %vm462_vm3, %v1378_v47  ;;  %v1463_v48 = vadd.f32 %v1381_v46, %v1378_v47 }
0x183f   : > { %1465 = vrot.lane.b32.xlu1 %v1463_v48, %s2995_s27 }
0x18ad   : > { %v1373_v49 = vpop.permute.xlu0 %1372 }
0x18ae   : > { %1375 = vst.msk [vmem:[#allocation2 + $0x10] sm:$0x3] %vm462_vm3, %v1373_v49  ;;  %2559 = vmatmul.mubr.msk.f32.vlgmr.msra.gmra.mxu0 %vm243_vm1, %v1373_v49 }
0x18af   : > { %2573 = vmatpush3.msra.mxu0 %v3176_v6  ;;  %2580 = vmatprep.mubr.msk.f32.mxu0 %vm2993_vm2, %v2992_v4 }
0x18b0   : > { %2574 = vmatprep.subr.mxu0 %v2992_v4 }
0x18b1   : > { %2575 = vmatpush3.msra.mxu0 %v3178_v7  ;;  %v1466_v61 = vpop.permute.xlu1 %1465 }
0x18b2   : > { %2576 = vmatprep.subr.mxu0 %v2992_v4 }
0x18b3   : > { %2577 = vmatpush3.msra.mxu0 %v3182_v9 }
0x18b4   : > { %2578 = vmatprep.subr.mxu0 %v2992_v4 }
0x18b5   : > { %2579 = vmatpush3.msra.mxu0 %v3186_v11 }
0x18b6   : > { %2594 = vmatprep.subr.mxu0 %v2992_v4 }
0x196e   : > { %v1451_v51 = vpop.f32.mrf.mxu0 }
0x196f   : > { %v1455_v52 = vadd.f32 %v1451_v51, %v1382_v50 }
0x1970   : > { %v2560_v53 = vpop.f32.mrf.mxu0 }
0x1971   : > { %2776 = vtanh.f32 %v1455_v52  ;;  %v2329_v55 = vmul.f32 -1.442695, %v1455_v52  ;;  %v1723_v53 = vld [vmem:[#allocation3 + $0x18] sm:$0x3] }
0x1973   : > { %2778 = vpow2.f32 %v2329_v55 }
0x197e   : > { %v2777_v54 = vpop.eup %2776 }
0x197f   : > { %1470 = vrot.lane.b32.xlu0 %v2777_v54, %s2994_s18 }
0x1980   : > { %v2779_v56 = vpop.eup %2778 }
0x1981   : > { %v1459_v57 = vadd.f32 1.0, %v2779_v56 }
0x1983   : > { %2780 = vrcp.f32 %v1459_v57 }
0x1990   : > { %v2781_v58 = vpop.eup %2780 }
0x1991   : > { %v1468_v62 = vmul.f32 %v2781_v58, %v1466_v61 }
0x19f1   : > { %v1471_v59 = vpop.permute.xlu0 %1470 }
0x19f2   : > { %v1473_v60 = vmul.f32 %v2781_v58, %v1471_v59 }
0x19f4   : > { %1475 = vrot.lane.b32.xlu0 %v1473_v60, %s2995_s27 }
0x1a66   : > { %v1476_v63 = vpop.permute.xlu0 %1475 }
0x1a67   : > { %v1478_v0 = vadd.f32 %v1476_v63, %v1468_v62 }
0x1a69   : > { %2782 = vtanh.f32 %v1478_v0 }
0x1a76   : > { %v2783_v1 = vpop.eup %2782 }
0x1a77   : > { %1481 = vrot.lane.b32.xlu1 %v2783_v1, %s2994_s18 }
0x1a7b   : > { %1491 = vrot.lane.b32.xlu1 %v1478_v0, %s2996_s28 }
0x1ae9   : > { %v1482_v2 = vpop.permute.xlu1 %1481 }
0x1aea   : > { %v1484_v3 = vmul.f32 %v2781_v58, %v1482_v2  ;;  %v1724_v58 = vld [vmem:[#allocation4 + $0x18] sm:$0x3] }
0x1aec   : > { %1486 = vrot.lane.b32.xlu0 %v1484_v3, %s2995_s27 }
0x1aed   : > { %v1492_v8 = vpop.permute.xlu1 %1491 }
0x1aee   : > { %1494 = vst.msk [vmem:[#allocation3 + $0x12] sm:$0x3] %vm462_vm3, %v1492_v8  ;;  %v1577_v10 = vadd.f32 %v1495_v5, %v1492_v8 }
0x1af0   : > { %1579 = vrot.lane.b32.xlu1 %v1577_v10, %s2995_s27 }
0x1b5e   : > { %v1487_v12 = vpop.permute.xlu0 %1486 }
0x1b5f   : > { %1489 = vst.msk [vmem:[#allocation2 + $0x12] sm:$0x3] %vm462_vm3, %v1487_v12  ;;  %2570 = vmatmul.mubr.msk.f32.vlgmr.msra.gmra.mxu1 %vm243_vm1, %v1487_v12 }
0x1b60   : > { %2584 = vmatpush3.msra.mxu1 %v3176_v6  ;;  %2591 = vmatprep.mubr.msk.f32.mxu1 %vm2993_vm2, %v2992_v4 }
0x1b61   : > { %2585 = vmatprep.subr.mxu1 %v2992_v4 }
0x1b62   : > { %2586 = vmatpush3.msra.mxu1 %v3178_v7 }
0x1b63   : > { %2587 = vmatprep.subr.mxu1 %v2992_v4 }
0x1b64   : > { %2588 = vmatpush3.msra.mxu1 %v3182_v9 }
0x1b65   : > { %2589 = vmatprep.subr.mxu1 %v2992_v4 }
0x1b66   : > { %2590 = vmatpush3.msra.mxu1 %v3186_v11  ;;  %v1580_v11 = vpop.permute.xlu1 %1579 }
0x1b67   : > { %2605 = vmatprep.subr.mxu1 %v2992_v4 }
0x1c1f   : > { %v1565_v14 = vpop.f32.mrf.mxu1 }
0x1c20   : > { %v1569_v6 = vadd.f32 %v1565_v14, %v1496_v13 }
0x1c21   : > { %v2571_v15 = vpop.f32.mrf.mxu1 }
0x1c22   : > { %2784 = vtanh.f32 %v1569_v6  ;;  %v2331_v17 = vmul.f32 -1.442695, %v1569_v6 }
0x1c24   : > { %2786 = vpow2.f32 %v2331_v17 }
0x1c2f   : > { %v2785_v16 = vpop.eup %2784 }
0x1c30   : > { %1584 = vrot.lane.b32.xlu0 %v2785_v16, %s2994_s18  ;;  %v1837_v16 = vld [vmem:[#allocation3 + $0x1a] sm:$0x3] }
0x1c31   : > { %v2787_v7 = vpop.eup %2786 }
0x1c32   : > { %v1573_v18 = vadd.f32 1.0, %v2787_v7 }
0x1c34   : > { %2788 = vrcp.f32 %v1573_v18 }
0x1c41   : > { %v2789_v9 = vpop.eup %2788 }
0x1c42   : > { %v1582_v21 = vmul.f32 %v2789_v9, %v1580_v11 }
0x1ca2   : > { %v1585_v19 = vpop.permute.xlu0 %1584 }
0x1ca3   : > { %v1587_v20 = vmul.f32 %v2789_v9, %v1585_v19 }
0x1ca5   : > { %1589 = vrot.lane.b32.xlu0 %v1587_v20, %s2995_s27 }
0x1d17   : > { %v1590_v22 = vpop.permute.xlu0 %1589 }
0x1d18   : > { %v1592_v23 = vadd.f32 %v1590_v22, %v1582_v21 }
0x1d1a   : > { %2790 = vtanh.f32 %v1592_v23 }
0x1d27   : > { %v2791_v24 = vpop.eup %2790 }
0x1d28   : > { %1595 = vrot.lane.b32.xlu1 %v2791_v24, %s2994_s18 }
0x1d2c   : > { %1605 = vrot.lane.b32.xlu1 %v1592_v23, %s2996_s28 }
0x1d9a   : > { %v1596_v25 = vpop.permute.xlu1 %1595 }
0x1d9b   : > { %v1598_v26 = vmul.f32 %v2789_v9, %v1596_v25  ;;  %v1838_v9 = vld [vmem:[#allocation4 + $0x1a] sm:$0x3] }
0x1d9d   : > { %1600 = vrot.lane.b32.xlu0 %v1598_v26, %s2995_s27 }
0x1d9e   : > { %v1606_v28 = vpop.permute.xlu1 %1605 }
0x1d9f   : > { %1608 = vst.msk [vmem:[#allocation3 + $0x14] sm:$0x3] %vm462_vm3, %v1606_v28  ;;  %v1691_v29 = vadd.f32 %v1609_v27, %v1606_v28 }
0x1da1   : > { %1693 = vrot.lane.b32.xlu1 %v1691_v29, %s2995_s27 }
0x1e0f   : > { %v1601_v30 = vpop.permute.xlu0 %1600 }
0x1e10   : > { %1603 = vst.msk [vmem:[#allocation2 + $0x14] sm:$0x3] %vm462_vm3, %v1601_v30  ;;  %2581 = vmatmul.mubr.msk.f32.vlgmr.msra.gmra.mxu0 %vm243_vm1, %v1601_v30 }
0x1e11   : > { %2595 = vmatpush3.msra.mxu0 %v3427_v31  ;;  %2602 = vmatprep.mubr.msk.f32.mxu0 %vm2993_vm2, %v2992_v4 }
0x1e12   : > { %2596 = vmatprep.subr.mxu0 %v2992_v4 }
0x1e13   : > { %2597 = vmatpush3.msra.mxu0 %v3433_v32  ;;  %v1694_v46 = vpop.permute.xlu1 %1693 }
0x1e14   : > { %2598 = vmatprep.subr.mxu0 %v2992_v4 }
0x1e15   : > { %2599 = vmatpush3.msra.mxu0 %v3437_v33 }
0x1e16   : > { %2600 = vmatprep.subr.mxu0 %v2992_v4 }
0x1e17   : > { %2601 = vmatpush3.msra.mxu0 %v3441_v34 }
0x1e18   : > { %2616 = vmatprep.subr.mxu0 %v2992_v4 }
0x1ed0   : > { %v1679_v36 = vpop.f32.mrf.mxu0 }
0x1ed1   : > { %v1683_v37 = vadd.f32 %v1679_v36, %v1610_v35 }
0x1ed2   : > { %v2582_v38 = vpop.f32.mrf.mxu0 }
0x1ed3   : > { %2792 = vtanh.f32 %v1683_v37  ;;  %v2333_v40 = vmul.f32 -1.442695, %v1683_v37  ;;  %v1952_v38 = vld [vmem:[#allocation4 + $0x1c] sm:$0x3] }
0x1ed5   : > { %2794 = vpow2.f32 %v2333_v40 }
0x1ee0   : > { %v2793_v39 = vpop.eup %2792 }
0x1ee1   : > { %1698 = vrot.lane.b32.xlu0 %v2793_v39, %s2994_s18 }
0x1ee2   : > { %v2795_v41 = vpop.eup %2794 }
0x1ee3   : > { %v1687_v42 = vadd.f32 1.0, %v2795_v41 }
0x1ee5   : > { %2796 = vrcp.f32 %v1687_v42 }
0x1ef2   : > { %v2797_v43 = vpop.eup %2796 }
0x1ef3   : > { %v1696_v47 = vmul.f32 %v2797_v43, %v1694_v46 }
0x1f53   : > { %v1699_v44 = vpop.permute.xlu0 %1698 }
0x1f54   : > { %v1701_v45 = vmul.f32 %v2797_v43, %v1699_v44 }
0x1f56   : > { %1703 = vrot.lane.b32.xlu0 %v1701_v45, %s2995_s27 }
0x1fc8   : > { %v1704_v48 = vpop.permute.xlu0 %1703 }
0x1fc9   : > { %v1706_v49 = vadd.f32 %v1704_v48, %v1696_v47 }
0x1fcb   : > { %2798 = vtanh.f32 %v1706_v49 }
0x1fd8   : > { %v2799_v50 = vpop.eup %2798 }
0x1fd9   : > { %1709 = vrot.lane.b32.xlu1 %v2799_v50, %s2994_s18 }
0x1fdd   : > { %1719 = vrot.lane.b32.xlu1 %v1706_v49, %s2996_s28 }
0x204b   : > { %v1710_v51 = vpop.permute.xlu1 %1709 }
0x204c   : > { %v1712_v52 = vmul.f32 %v2797_v43, %v1710_v51 }
0x204e   : > { %1714 = vrot.lane.b32.xlu0 %v1712_v52, %s2995_s27 }
0x204f   : > { %v1720_v54 = vpop.permute.xlu1 %1719 }
0x2050   : > { %1722 = vst.msk [vmem:[#allocation3 + $0x16] sm:$0x3] %vm462_vm3, %v1720_v54  ;;  %v1805_v55 = vadd.f32 %v1723_v53, %v1720_v54 }
0x2052   : > { %1807 = vrot.lane.b32.xlu1 %v1805_v55, %s2995_s27 }
0x20c0   : > { %v1715_v56 = vpop.permute.xlu0 %1714 }
0x20c1   : > { %1717 = vst.msk [vmem:[#allocation2 + $0x16] sm:$0x3] %vm462_vm3, %v1715_v56  ;;  %2592 = vmatmul.mubr.msk.f32.vlgmr.msra.gmra.mxu1 %vm243_vm1, %v1715_v56  ;;  %v2065_v56 = vld [vmem:[#allocation3 + $0x1e] sm:$0x3] }
0x20c2   : > { %2606 = vmatpush3.msra.mxu1 %v3427_v31  ;;  %2613 = vmatprep.mubr.msk.f32.mxu1 %vm2993_vm2, %v2992_v4 }
0x20c3   : > { %2607 = vmatprep.subr.mxu1 %v2992_v4 }
0x20c4   : > { %2608 = vmatpush3.msra.mxu1 %v3433_v32  ;;  %v1808_v8 = vpop.permute.xlu1 %1807 }
0x20c5   : > { %2609 = vmatprep.subr.mxu1 %v2992_v4 }
0x20c6   : > { %2610 = vmatpush3.msra.mxu1 %v3437_v33 }
0x20c7   : > { %2611 = vmatprep.subr.mxu1 %v2992_v4 }
0x20c8   : > { %2612 = vmatpush3.msra.mxu1 %v3441_v34  ;;  %v2181_v57 = vld [vmem:[#allocation2 + $0x10] sm:$0xff] }
0x20c9   : > { %2185 = vst.msk [vmem:[%s3170_s20 + $0x10] sm:$0xff] %vm243_vm1, %v2181_v57 }
0x2181   : > { %v1793_v59 = vpop.f32.mrf.mxu1 }
0x2182   : > { %v1797_v60 = vadd.f32 %v1793_v59, %v1724_v58 }
0x2183   : > { %v2593_v61 = vpop.f32.mrf.mxu1 }
0x2184   : > { %2800 = vtanh.f32 %v1797_v60  ;;  %v2335_v63 = vmul.f32 -1.442695, %v1797_v60  ;;  %v2066_v60 = vld [vmem:[#allocation4 + $0x1e] sm:$0x3] }
0x2186   : > { %2802 = vpow2.f32 %v2335_v63 }
0x2191   : > { %v2801_v62 = vpop.eup %2800 }
0x2192   : > { %1812 = vrot.lane.b32.xlu0 %v2801_v62, %s2994_s18 }
0x2193   : > { %v2803_v0 = vpop.eup %2802 }
0x2194   : > { %v1801_v1 = vadd.f32 1.0, %v2803_v0 }
0x2196   : > { %2804 = vrcp.f32 %v1801_v1 }
0x21a3   : > { %v2805_v2 = vpop.eup %2804 }
0x21a4   : > { %v1810_v10 = vmul.f32 %v2805_v2, %v1808_v8 }
0x2204   : > { %v1813_v3 = vpop.permute.xlu0 %1812 }
0x2205   : > { %v1815_v5 = vmul.f32 %v2805_v2, %v1813_v3 }
0x2207   : > { %1817 = vrot.lane.b32.xlu0 %v1815_v5, %s2995_s27 }
0x2279   : > { %v1818_v12 = vpop.permute.xlu0 %1817 }
0x227a   : > { %v1820_v13 = vadd.f32 %v1818_v12, %v1810_v10 }
0x227c   : > { %2806 = vtanh.f32 %v1820_v13 }
0x2289   : > { %v2807_v14 = vpop.eup %2806 }
0x228a   : > { %1823 = vrot.lane.b32.xlu1 %v2807_v14, %s2994_s18 }
0x228e   : > { %1833 = vrot.lane.b32.xlu1 %v1820_v13, %s2996_s28 }
0x22fc   : > { %v1824_v6 = vpop.permute.xlu1 %1823 }
0x22fd   : > { %v1826_v15 = vmul.f32 %v2805_v2, %v1824_v6 }
0x22ff   : > { %1828 = vrot.lane.b32.xlu0 %v1826_v15, %s2995_s27 }
0x2300   : > { %v1834_v17 = vpop.permute.xlu1 %1833 }
0x2301   : > { %1836 = vst.msk [vmem:[#allocation3 + $0x18] sm:$0x3] %vm462_vm3, %v1834_v17  ;;  %v1919_v7 = vadd.f32 %v1837_v16, %v1834_v17 }
0x2303   : > { %1921 = vrot.lane.b32.xlu1 %v1919_v7, %s2995_s27 }
0x2371   : > { %v1829_v18 = vpop.permute.xlu0 %1828 }
0x2372   : > { %1831 = vst.msk [vmem:[#allocation2 + $0x18] sm:$0x3] %vm462_vm3, %v1829_v18  ;;  %2603 = vmatmul.mubr.msk.f32.vlgmr.msra.gmra.mxu0 %vm243_vm1, %v1829_v18 }
0x2373   : > { %2617 = vmatpush3.msra.mxu0 %v3427_v31  ;;  %2624 = vmatprep.mubr.msk.f32.mxu0 %vm2993_vm2, %v2992_v4 }
0x2374   : > { %2618 = vmatprep.subr.mxu0 %v2992_v4 }
0x2375   : > { %2619 = vmatpush3.msra.mxu0 %v3433_v32 }
0x2376   : > { %2620 = vmatprep.subr.mxu0 %v2992_v4 }
0x2377   : > { %2621 = vmatpush3.msra.mxu0 %v3437_v33 }
0x2378   : > { %2622 = vmatprep.subr.mxu0 %v2992_v4  ;;  %v1922_v4 = vpop.permute.xlu1 %1921 }
0x2379   : > { %2623 = vmatpush3.msra.mxu0 %v3441_v34  ;;  %v1951_v34 = vld [vmem:[#allocation3 + $0x1c] sm:$0x3] }
0x2432   : > { %v1907_v19 = vpop.f32.mrf.mxu0 }
0x2433   : > { %v1911_v20 = vadd.f32 %v1907_v19, %v1838_v9 }
0x2434   : > { %v2604_v11 = vpop.f32.mrf.mxu0 }
0x2435   : > { %2808 = vtanh.f32 %v1911_v20  ;;  %v2337_v22 = vmul.f32 -1.442695, %v1911_v20 }
0x2437   : > { %2810 = vpow2.f32 %v2337_v22 }
0x2442   : > { %v2809_v21 = vpop.eup %2808 }
0x2443   : > { %1926 = vrot.lane.b32.xlu0 %v2809_v21, %s2994_s18 }
0x2444   : > { %v2811_v23 = vpop.eup %2810 }
0x2445   : > { %v1915_v24 = vadd.f32 1.0, %v2811_v23 }
0x2447   : > { %2812 = vrcp.f32 %v1915_v24 }
0x2454   : > { %v2813_v25 = vpop.eup %2812 }
0x2455   : > { %v1924_v28 = vmul.f32 %v2813_v25, %v1922_v4 }
0x24b5   : > { %v1927_v26 = vpop.permute.xlu0 %1926 }
0x24b6   : > { %v1929_v27 = vmul.f32 %v2813_v25, %v1927_v26 }
0x24b8   : > { %1931 = vrot.lane.b32.xlu0 %v1929_v27, %s2995_s27 }
0x252a   : > { %v1932_v29 = vpop.permute.xlu0 %1931 }
0x252b   : > { %v1934_v30 = vadd.f32 %v1932_v29, %v1924_v28 }
0x252d   : > { %2814 = vtanh.f32 %v1934_v30 }
0x253a   : > { %v2815_v31 = vpop.eup %2814 }
0x253b   : > { %1937 = vrot.lane.b32.xlu1 %v2815_v31, %s2994_s18 }
0x253f   : > { %1947 = vrot.lane.b32.xlu1 %v1934_v30, %s2996_s28 }
0x25ad   : > { %v1938_v32 = vpop.permute.xlu1 %1937 }
0x25ae   : > { %v1940_v33 = vmul.f32 %v2813_v25, %v1938_v32 }
0x25b0   : > { %1942 = vrot.lane.b32.xlu0 %v1940_v33, %s2995_s27 }
0x25b1   : > { %v1948_v35 = vpop.permute.xlu1 %1947 }
0x25b2   : > { %1950 = vst.msk [vmem:[#allocation3 + $0x1a] sm:$0x3] %vm462_vm3, %v1948_v35  ;;  %v2033_v36 = vadd.f32 %v1951_v34, %v1948_v35 }
0x25b4   : > { %2035 = vrot.lane.b32.xlu1 %v2033_v36, %s2995_s27 }
0x2622   : > { %v1943_v37 = vpop.permute.xlu0 %1942 }
0x2623   : > { %1945 = vst.msk [vmem:[#allocation2 + $0x1a] sm:$0x3] %vm462_vm3, %v1943_v37  ;;  %2614 = vmatmul.mubr.msk.f32.vlgmr.msra.gmra.mxu1 %vm243_vm1, %v1943_v37 }
0x2626   : > { %v2036_v49 = vpop.permute.xlu1 %2035 }
0x26e3   : > { %v2021_v39 = vpop.f32.mrf.mxu1 }
0x26e4   : > { %v2025_v40 = vadd.f32 %v2021_v39, %v1952_v38 }
0x26e5   : > { %v2615_v41 = vpop.f32.mrf.mxu1 }
0x26e6   : > { %2816 = vtanh.f32 %v2025_v40  ;;  %v2339_v43 = vmul.f32 -1.442695, %v2025_v40 }
0x26e8   : > { %2818 = vpow2.f32 %v2339_v43 }
0x26f3   : > { %v2817_v42 = vpop.eup %2816 }
0x26f4   : > { %2040 = vrot.lane.b32.xlu0 %v2817_v42, %s2994_s18 }
0x26f5   : > { %v2819_v44 = vpop.eup %2818 }
0x26f6   : > { %v2029_v45 = vadd.f32 1.0, %v2819_v44 }
0x26f8   : > { %2820 = vrcp.f32 %v2029_v45 }
0x2705   : > { %v2821_v46 = vpop.eup %2820 }
0x2706   : > { %v2038_v50 = vmul.f32 %v2821_v46, %v2036_v49 }
0x2766   : > { %v2041_v47 = vpop.permute.xlu0 %2040 }
0x2767   : > { %v2043_v48 = vmul.f32 %v2821_v46, %v2041_v47 }
0x2769   : > { %2045 = vrot.lane.b32.xlu0 %v2043_v48, %s2995_s27 }
0x27db   : > { %v2046_v51 = vpop.permute.xlu0 %2045 }
0x27dc   : > { %v2048_v52 = vadd.f32 %v2046_v51, %v2038_v50 }
0x27de   : > { %2822 = vtanh.f32 %v2048_v52 }
0x27eb   : > { %v2823_v53 = vpop.eup %2822 }
0x27ec   : > { %2051 = vrot.lane.b32.xlu1 %v2823_v53, %s2994_s18 }
0x27f0   : > { %2061 = vrot.lane.b32.xlu1 %v2048_v52, %s2996_s28 }
0x285e   : > { %v2052_v54 = vpop.permute.xlu1 %2051 }
0x285f   : > { %v2054_v55 = vmul.f32 %v2821_v46, %v2052_v54 }
0x2861   : > { %2056 = vrot.lane.b32.xlu0 %v2054_v55, %s2995_s27 }
0x2862   : > { %v2062_v57 = vpop.permute.xlu1 %2061 }
0x2863   : > { %2064 = vst.msk [vmem:[#allocation3 + $0x1c] sm:$0x3] %vm462_vm3, %v2062_v57  ;;  %v2147_v58 = vadd.f32 %v2065_v56, %v2062_v57 }
0x2865   : > { %2149 = vrot.lane.b32.xlu1 %v2147_v58, %s2995_s27 }
0x28d3   : > { %v2057_v59 = vpop.permute.xlu0 %2056 }
0x28d4   : > { %2059 = vst.msk [vmem:[#allocation2 + $0x1c] sm:$0x3] %vm462_vm3, %v2057_v59  ;;  %2625 = vmatmul.mubr.msk.f32.vlgmr.msra.gmra.mxu0 %vm243_vm1, %v2057_v59 }
0x28d7   : > { %v2150_v12 = vpop.permute.xlu1 %2149 }
0x2994   : > { %v2135_v61 = vpop.f32.mrf.mxu0 }
0x2995   : > { %v2139_v62 = vadd.f32 %v2135_v61, %v2066_v60 }
0x2996   : > { %v2626_v63 = vpop.f32.mrf.mxu0 }
0x2997   : > { %2824 = vtanh.f32 %v2139_v62  ;;  %v2341_v1 = vmul.f32 -1.442695, %v2139_v62 }
0x2999   : > { %2826 = vpow2.f32 %v2341_v1 }
0x29a4   : > { %v2825_v0 = vpop.eup %2824 }
0x29a5   : > { %2154 = vrot.lane.b32.xlu0 %v2825_v0, %s2994_s18 }
0x29a6   : > { %v2827_v2 = vpop.eup %2826 }
0x29a7   : > { %v2143_v3 = vadd.f32 1.0, %v2827_v2 }
0x29a9   : > { %2828 = vrcp.f32 %v2143_v3 }
0x29b6   : > { %v2829_v5 = vpop.eup %2828 }
0x29b7   : > { %v2152_v13 = vmul.f32 %v2829_v5, %v2150_v12 }
0x2a17   : > { %v2155_v8 = vpop.permute.xlu0 %2154 }
0x2a18   : > { %v2157_v10 = vmul.f32 %v2829_v5, %v2155_v8 }
0x2a1a   : > { %2159 = vrot.lane.b32.xlu0 %v2157_v10, %s2995_s27 }
0x2a8c   : > { %v2160_v14 = vpop.permute.xlu0 %2159 }
0x2a8d   : > { %v2162_v6 = vadd.f32 %v2160_v14, %v2152_v13 }
0x2a8f   : > { %2830 = vtanh.f32 %v2162_v6 }
0x2a9c   : > { %v2831_v15 = vpop.eup %2830 }
0x2a9d   : > { %2165 = vrot.lane.b32.xlu1 %v2831_v15, %s2994_s18 }
0x2aa1   : > { %2175 = vrot.lane.b32.xlu1 %v2162_v6, %s2996_s28 }
0x2b0f   : > { %v2166_v16 = vpop.permute.xlu1 %2165 }
0x2b10   : > { %v2168_v17 = vmul.f32 %v2829_v5, %v2166_v16 }
0x2b12   : > { %2170 = vrot.lane.b32.xlu0 %v2168_v17, %s2995_s27 }
0x2b13   : > { %v2176_v7 = vpop.permute.xlu1 %2175 }
0x2b14   : > { %2178 = vst.msk [vmem:[#allocation3 + $0x1e] sm:$0x3] %vm462_vm3, %v2176_v7 }
0x2b84   : > { %v2171_v18 = vpop.permute.xlu0 %2170 }
0x2b85   : > { %2173 = vst.msk [vmem:[#allocation2 + $0x1e] sm:$0x3] %vm462_vm3, %v2171_v18 }
0x2b8c   : > { %v2182_v9 = vld [vmem:[#allocation2 + $0x18] sm:$0xff] }
0x2b8d   : > { %2186 = vst.msk [vmem:[%s3170_s20 + $0x18] sm:$0xff] %vm243_vm1, %v2182_v9 }
0x2b8e   : > { %2929 = shalt.err (!%p2926_p11)
}
0x2b8f   : > { %s2930_s26 = scalar_lea.hbm %s3513_s21, 512  ;;  %s2934_s9 = scalar_lea.hbm %s3562_s3, 8192 }
0x2b90   : > { %p2931_p10 = scmp.ne.s32.totalorder %s3513_s21, %s2930_s26  ;;  %p2935_p6 = scmp.lt.s32.totalorder %s3513_s21, %s3562_s3 }
0x2b91   : > { %p2936_p9 = scmp.lt.s32.totalorder %s2934_s9, %s2930_s26 }
0x2b92   : > { %p2932_p1 = pnand %p2931_p10, %p3578_p7 }
0x2b93   : > { %p2937_p5 = por %p2936_p9, %p2935_p6 }
0x2b94   : > { %p2933_p4 = pneg %p2932_p1 }
0x2b96   : > { %p2938_p2 = pnand %p2937_p5, %p2933_p4 }
0x2b98   : > { %2941 = shalt.err (!%p2938_p2)
}
0x2b99   : > { %s2998_s27 = smov 128   ;;  %s2999_s28 = smov 8  }
0x2b9a   : > { %2637 = dma.vmem_to_hbm [thread:$0]  (%p3578_p7), %s3515_s29, 512, %s3513_s21, %s2188_s22, %s2998_s27, %s2998_s27, %s2999_s28  }
0x2b9b PF: > { %p2659_p12 = scmp.ge.s32.totalorder %s2984_s15, 2  ;;  %s2216_s25 = sand.u32 1, %s2972_s12  }
0x2b9c   : > { %p3579_p13 = scmp.ne.s32.totalorder %s3568_s19, 0  ;;  %s2217_s30 = scalar_lea.sflag [#allocation7], %s2216_s25 }
0x2b9e   : > { %p2651_p0 = pnand %p2659_p12, %p3579_p13 }
0x2ba0   : > { %p2652_p8 = pneg %p2651_p0 }
0x2ba2   : > { %2967 = dma.done.wait (%p2652_p8), %s2217_s30, 512  }
0x2ba3   : > { %2969 = vsyncadd (%p2652_p8), %s2217_s30, 4294966784  ;;  %p17_p3 = scmp.ge.s32.totalorder %s3098_s7, 18   ;;  %s3580_s12 = smov %s2976_s13 }
0x2ba4   : > { %s3581_s13 = smov %s2980_s14  ;;  %s3582_s14 = smov %s3114_s11 }
0x2ba5   : > { %s3583_s15 = smov %s3098_s7  ;;  %19 = sbr.rel (!%p17_p3) target bundleno = 6 (0x6), region = 89 }
0x2baa   :  { %2222 = vsyncpa [#allocation6], 1 }
0x2bab   :  { %2224 = vsyncpa [#allocation6 + $0x1], 1 }
0x2bac   :  { %2225 = vsyncpa [#allocation9], 1 }
0x2bad   :  { %2226 = vsyncpa [#allocation7], 1 }
0x2bae   :  { %2228 = vsyncpa [#allocation7 + $0x1], 1 }

</bundles_post_ra>
